<compile_context>
chip_gen: v7x
topology: tpu7x:2x2x1
jax: 0.10.0
libtpu: 0.0.40
codegen_flags: <defaults>
</compile_context>

<pallas_src>
import jax
import jax.numpy as jnp
from jax.experimental import pallas as pl
from jax.experimental.pallas import tpu as pltpu

# ---------------------------------------------------------------------------
# Config (mirrors the PyTorch Config class)
# ---------------------------------------------------------------------------
HIDDEN_LAYERS = 6
NEURONS_PER_LAYER = 128
HEAD_HIDDEN = 64
CUBE_SIZE = 280.0          # Config.STANSTEAD_SIZE


# ---------------------------------------------------------------------------
# Pallas kernel: whole forward pass for one batch tile
# ---------------------------------------------------------------------------
def _pinn_kernel(x_ref, *refs):
    """refs = (w0f, b0f, w1..w6 / b1..b6, hw1, hb1, hw2, hb2, out_ref)

    w0f/b0f already contain the folded input normalization.
    hw1 = [pw1 | kw1] (128,128), hw2 = blockdiag(pw2, kw2) (128,2).
    out_ref is (tile_b, 2): col 0 = pressure, col 1 = permeability.
    """
    out_ref = refs[-1]
    params = refs[:-1]

    # --- first layer (K=3): VPU broadcast FMAs, normalization pre-folded ---
    x = x_ref[...].astype(jnp.float32)               # (tb, 3)
    w0 = params[0][...]                              # (3, 128) f32
    b0 = params[1][...]                              # (1, 128) f32
    pre = (x[:, 0:1] * w0[0:1, :] +
           x[:, 1:2] * w0[1:2, :] +
           x[:, 2:3] * w0[2:3, :] + b0)
    h = jnp.tanh(pre.astype(jnp.bfloat16))           # bf16 activations

    # --- 6 hidden layers: bf16 matmul on MXU, f32 accumulate, bf16 tanh ----
    idx = 2
    for _ in range(HIDDEN_LAYERS):
        w = params[idx][...]                         # (128, 128) bf16
        b = params[idx + 1][...]                     # (1, 128) f32
        idx += 2
        pre = jnp.dot(h, w, preferred_element_type=jnp.float32) + b
        h = jnp.tanh(pre.astype(jnp.bfloat16))

    # --- fused heads --------------------------------------------------------
    hw1 = params[idx][...]                           # (128, 128) bf16
    hb1 = params[idx + 1][...]                       # (1, 128) f32
    hw2 = params[idx + 2][...]                       # (128, 2)  bf16
    hb2 = params[idx + 3][...]                       # (1, 2)    f32
    pre = jnp.dot(h, hw1, preferred_element_type=jnp.float32) + hb1
    hh = jnp.tanh(pre.astype(jnp.bfloat16))          # (tb, 128) bf16
    res = jnp.dot(hh, hw2, preferred_element_type=jnp.float32) + hb2  # (tb, 2)

    # column 0 = pressure, column 1 = log_perm -> exp
    col = jax.lax.broadcasted_iota(jnp.int32, res.shape, 1)
    res = jnp.where(col == 1, jnp.exp(res), res)

    out_ref[...] = res.astype(out_ref.dtype)


# ---------------------------------------------------------------------------
# Parameter packing (wrapper-side): fold normalization, fuse heads, cast bf16
# ---------------------------------------------------------------------------
def pack_params(params, cube_size):
    """params: flat f32 list [w0,b0,...,w6,b6, pw1,pb1,pw2,pb2, kw1,kb1,kw2,kb2]
    with weights [in,out] and biases (1,out)."""
    w0, b0 = params[0], params[1]
    # x_norm = 2*x/c - 1  ==>  x_norm @ W + b = x @ (2W/c) + (b - sum_k W[k,:])
    w0f = (2.0 / cube_size) * w0
    b0f = b0 - jnp.sum(w0, axis=0, keepdims=True)
    packed = [w0f.astype(jnp.float32), b0f.astype(jnp.float32)]

    idx = 2
    for _ in range(HIDDEN_LAYERS):
        packed.append(params[idx].astype(jnp.bfloat16))
        packed.append(params[idx + 1].astype(jnp.float32))
        idx += 2

    pw1, pb1, pw2, pb2 = params[idx:idx + 4]
    idx += 4
    kw1, kb1, kw2, kb2 = params[idx:idx + 4]

    hw1 = jnp.concatenate([pw1, kw1], axis=1)                # (128, 128)
    hb1 = jnp.concatenate([pb1, kb1], axis=1)                # (1, 128)
    hw2 = jnp.zeros((2 * HEAD_HIDDEN, 2), jnp.float32)
    hw2 = hw2.at[:HEAD_HIDDEN, 0:1].set(pw2)
    hw2 = hw2.at[HEAD_HIDDEN:, 1:2].set(kw2)                 # (128, 2) block-diag
    hb2 = jnp.concatenate([pb2, kb2], axis=1)                # (1, 2)

    packed += [hw1.astype(jnp.bfloat16), hb1.astype(jnp.float32),
               hw2.astype(jnp.bfloat16), hb2.astype(jnp.float32)]
    return packed


# ---------------------------------------------------------------------------
# Wrapper
# ---------------------------------------------------------------------------
def granite_pinn_forward(x, params, *, cube_size=CUBE_SIZE, tile_b=512):
    """x: (B, 3) float32.  params: flat f32 list as in init_params().
    Returns (pressure (B,1), permeability (B,1)) in float32."""
    B, F = x.shape
    assert F == 3
    assert tile_b % 8 == 0

    packed = pack_params(params, cube_size)

    # Pad batch to a multiple of tile_b (padded rows are computed and dropped).
    Bp = ((B + tile_b - 1) // tile_b) * tile_b
    if Bp != B:
        x = jnp.pad(x, ((0, Bp - B), (0, 0)))
    grid = (Bp // tile_b,)   # keep >= 2 steps where possible (v7x dual-TC)

    x_spec = pl.BlockSpec((tile_b, F), lambda i: (i, 0))
    # Params: full array every step, constant block index -> resident in VMEM
    # (Pallas skips re-DMA when the block index does not change).
    param_specs = [pl.BlockSpec(p.shape, lambda i: (0, 0)) for p in packed]
    out_spec = pl.BlockSpec((tile_b, 2), lambda i: (i, 0))
    out_shape = jax.ShapeDtypeStruct((Bp, 2), jnp.float32)

    out = pl.pallas_call(
        _pinn_kernel,
        out_shape=out_shape,
        grid_spec=pltpu.PrefetchScalarGridSpec(
            num_scalar_prefetch=0,
            grid=grid,
            in_specs=[x_spec] + param_specs,
            out_specs=out_spec,
        ),
        compiler_params=pltpu.CompilerParams(
            dimension_semantics=("parallel",)),
    )(x, *packed)

    pressure = out[:B, 0:1]
    permeability = out[:B, 1:2]
    return pressure, permeability


# ---------------------------------------------------------------------------
# Deterministic parameter initialization (PyTorch-style uniform +/-1/sqrt(fan_in))
# ---------------------------------------------------------------------------
def init_params(key):
    def linear(key, fan_in, fan_out):
        kw, kb = jax.random.split(key)
        bound = 1.0 / jnp.sqrt(jnp.float32(fan_in))
        w = jax.random.uniform(kw, (fan_in, fan_out), jnp.float32, -bound, bound)
        b = jax.random.uniform(kb, (1, fan_out), jnp.float32, -bound, bound)
        return w, b

    params = []
    dims = [(3, NEURONS_PER_LAYER)] + \
           [(NEURONS_PER_LAYER, NEURONS_PER_LAYER)] * HIDDEN_LAYERS
    keys = jax.random.split(key, len(dims) + 4)
    for k, (fi, fo) in zip(keys[:len(dims)], dims):
        params.extend(linear(k, fi, fo))
    # pressure head
    params.extend(linear(keys[len(dims) + 0], NEURONS_PER_LAYER, HEAD_HIDDEN))
    params.extend(linear(keys[len(dims) + 1], HEAD_HIDDEN, 1))
    # permeability head
    params.extend(linear(keys[len(dims) + 2], NEURONS_PER_LAYER, HEAD_HIDDEN))
    params.extend(linear(keys[len(dims) + 3], HEAD_HIDDEN, 1))
    return params


# ---------------------------------------------------------------------------
# Pure-JAX f32 reference for sanity checking
# ---------------------------------------------------------------------------
def reference_forward(x, params, cube_size=CUBE_SIZE):
    h = 2.0 * x / cube_size - 1.0
    idx = 0
    for _ in range(1 + HIDDEN_LAYERS):
        h = jnp.tanh(h @ params[idx] + params[idx + 1])
        idx += 2
    hp = jnp.tanh(h @ params[idx] + params[idx + 1])
    pressure = hp @ params[idx + 2] + params[idx + 3]
    idx += 4
    hk = jnp.tanh(h @ params[idx] + params[idx + 1])
    permeability = jnp.exp(hk @ params[idx + 2] + params[idx + 3])
    return pressure, permeability


if __name__ == "__main__":
    key = jax.random.PRNGKey(0)
    k_params, k_x = jax.random.split(key)

    params = init_params(k_params)
    # coordinates in [0, cube_size]; B=256 -> 2 grid steps at tile_b=128
    B = 256
    x = jax.random.uniform(k_x, (B, 3), jnp.float32, 0.0, CUBE_SIZE)

    pressure, permeability = granite_pinn_forward(x, params, tile_b=128)
    jax.block_until_ready((pressure, permeability))

    # correctness check against the plain-JAX f32 reference
    # (tolerance loosened: kernel runs matmuls/tanh in bf16 with f32 accum)
    p_ref, k_ref = reference_forward(x, params)
    assert pressure.shape == (B, 1) and permeability.shape == (B, 1)
    assert jnp.allclose(pressure, p_ref, atol=1e-1, rtol=1e-1), (
        float(jnp.max(jnp.abs(pressure - p_ref))))
    assert jnp.allclose(permeability, k_ref, atol=1e-1, rtol=1e-1), (
        float(jnp.max(jnp.abs(permeability - k_ref))))

    print("KERNEL_OK")
</pallas_src>

<mosaic_0001>
module attributes {stable_mosaic.version = 11 : i64} {
  func.func @_pinn_kernel(%arg0: i32, %arg1: memref<128x3xf32, #tpu.memory_space<vmem>>, %arg2: memref<3x128xf32, #tpu.memory_space<vmem>>, %arg3: memref<1x128xf32, #tpu.memory_space<vmem>>, %arg4: memref<128x128xbf16, #tpu.memory_space<vmem>>, %arg5: memref<1x128xf32, #tpu.memory_space<vmem>>, %arg6: memref<128x128xbf16, #tpu.memory_space<vmem>>, %arg7: memref<1x128xf32, #tpu.memory_space<vmem>>, %arg8: memref<128x128xbf16, #tpu.memory_space<vmem>>, %arg9: memref<1x128xf32, #tpu.memory_space<vmem>>, %arg10: memref<128x128xbf16, #tpu.memory_space<vmem>>, %arg11: memref<1x128xf32, #tpu.memory_space<vmem>>, %arg12: memref<128x128xbf16, #tpu.memory_space<vmem>>, %arg13: memref<1x128xf32, #tpu.memory_space<vmem>>, %arg14: memref<128x128xbf16, #tpu.memory_space<vmem>>, %arg15: memref<1x128xf32, #tpu.memory_space<vmem>>, %arg16: memref<128x128xbf16, #tpu.memory_space<vmem>>, %arg17: memref<1x128xf32, #tpu.memory_space<vmem>>, %arg18: memref<128x2xbf16, #tpu.memory_space<vmem>>, %arg19: memref<1x2xf32, #tpu.memory_space<vmem>>, %arg20: memref<128x2xf32, #tpu.memory_space<vmem>>) attributes {dimension_semantics = [#tpu.dimension_semantics<parallel>], iteration_bounds = array<i64: 2>, scalar_prefetch = 0 : i64, scratch_operands = 0 : i64, tpu.core_type = #tpu.core_type<tc>, window_params = [{transform_indices = @transform_0, window_bounds = array<i64: 128, 3>}, {pipeline_mode = #tpu.pipeline_mode<synchronous>, transform_indices = @transform_1, window_bounds = array<i64: 3, 128>}, {pipeline_mode = #tpu.pipeline_mode<synchronous>, transform_indices = @transform_2, window_bounds = array<i64: 1, 128>}, {pipeline_mode = #tpu.pipeline_mode<synchronous>, transform_indices = @transform_3, window_bounds = array<i64: 128, 128>}, {pipeline_mode = #tpu.pipeline_mode<synchronous>, transform_indices = @transform_4, window_bounds = array<i64: 1, 128>}, {pipeline_mode = #tpu.pipeline_mode<synchronous>, transform_indices = @transform_5, window_bounds = array<i64: 128, 128>}, {pipeline_mode = #tpu.pipeline_mode<synchronous>, transform_indices = @transform_6, window_bounds = array<i64: 1, 128>}, {pipeline_mode = #tpu.pipeline_mode<synchronous>, transform_indices = @transform_7, window_bounds = array<i64: 128, 128>}, {pipeline_mode = #tpu.pipeline_mode<synchronous>, transform_indices = @transform_8, window_bounds = array<i64: 1, 128>}, {pipeline_mode = #tpu.pipeline_mode<synchronous>, transform_indices = @transform_9, window_bounds = array<i64: 128, 128>}, {pipeline_mode = #tpu.pipeline_mode<synchronous>, transform_indices = @transform_10, window_bounds = array<i64: 1, 128>}, {pipeline_mode = #tpu.pipeline_mode<synchronous>, transform_indices = @transform_11, window_bounds = array<i64: 128, 128>}, {pipeline_mode = #tpu.pipeline_mode<synchronous>, transform_indices = @transform_12, window_bounds = array<i64: 1, 128>}, {pipeline_mode = #tpu.pipeline_mode<synchronous>, transform_indices = @transform_13, window_bounds = array<i64: 128, 128>}, {pipeline_mode = #tpu.pipeline_mode<synchronous>, transform_indices = @transform_14, window_bounds = array<i64: 1, 128>}, {pipeline_mode = #tpu.pipeline_mode<synchronous>, transform_indices = @transform_15, window_bounds = array<i64: 128, 128>}, {pipeline_mode = #tpu.pipeline_mode<synchronous>, transform_indices = @transform_16, window_bounds = array<i64: 1, 128>}, {pipeline_mode = #tpu.pipeline_mode<synchronous>, transform_indices = @transform_17, window_bounds = array<i64: 128, 2>}, {pipeline_mode = #tpu.pipeline_mode<synchronous>, transform_indices = @transform_18, window_bounds = array<i64: 1, 2>}, {transform_indices = @transform_19, window_bounds = array<i64: 128, 2>}]} {
    %c0 = arith.constant 0 : index
    %c0_0 = arith.constant 0 : index
    %0 = vector.load %arg1[%c0, %c0_0] : memref<128x3xf32, #tpu.memory_space<vmem>>, vector<128x3xf32>
    %c0_1 = arith.constant 0 : index
    %c0_2 = arith.constant 0 : index
    %1 = vector.load %arg2[%c0_1, %c0_2] : memref<3x128xf32, #tpu.memory_space<vmem>>, vector<3x128xf32>
    %c0_3 = arith.constant 0 : index
    %c0_4 = arith.constant 0 : index
    %2 = vector.load %arg3[%c0_3, %c0_4] : memref<1x128xf32, #tpu.memory_space<vmem>>, vector<1x128xf32>
    %3 = vector.extract_strided_slice %0 {offsets = [0, 0], sizes = [128, 1], strides = [1, 1]} : vector<128x3xf32> to vector<128x1xf32>
    %4 = vector.extract_strided_slice %1 {offsets = [0, 0], sizes = [1, 128], strides = [1, 1]} : vector<3x128xf32> to vector<1x128xf32>
    %5 = vector.broadcast %3 : vector<128x1xf32> to vector<128x128xf32>
    %6 = vector.broadcast %4 : vector<1x128xf32> to vector<128x128xf32>
    %7 = arith.mulf %5, %6 : vector<128x128xf32>
    %8 = vector.extract_strided_slice %0 {offsets = [0, 1], sizes = [128, 1], strides = [1, 1]} : vector<128x3xf32> to vector<128x1xf32>
    %9 = vector.extract_strided_slice %1 {offsets = [1, 0], sizes = [1, 128], strides = [1, 1]} : vector<3x128xf32> to vector<1x128xf32>
    %10 = vector.broadcast %8 : vector<128x1xf32> to vector<128x128xf32>
    %11 = vector.broadcast %9 : vector<1x128xf32> to vector<128x128xf32>
    %12 = arith.mulf %10, %11 : vector<128x128xf32>
    %13 = arith.addf %7, %12 : vector<128x128xf32>
    %14 = vector.extract_strided_slice %0 {offsets = [0, 2], sizes = [128, 1], strides = [1, 1]} : vector<128x3xf32> to vector<128x1xf32>
    %15 = vector.extract_strided_slice %1 {offsets = [2, 0], sizes = [1, 128], strides = [1, 1]} : vector<3x128xf32> to vector<1x128xf32>
    %16 = vector.broadcast %14 : vector<128x1xf32> to vector<128x128xf32>
    %17 = vector.broadcast %15 : vector<1x128xf32> to vector<128x128xf32>
    %18 = arith.mulf %16, %17 : vector<128x128xf32>
    %19 = arith.addf %13, %18 : vector<128x128xf32>
    %20 = vector.broadcast %2 : vector<1x128xf32> to vector<128x128xf32>
    %21 = arith.addf %19, %20 : vector<128x128xf32>
    %22 = arith.truncf %21 : vector<128x128xf32> to vector<128x128xbf16>
    %23 = math.tanh %22 : vector<128x128xbf16>
    %c0_5 = arith.constant 0 : index
    %c0_6 = arith.constant 0 : index
    %24 = vector.load %arg4[%c0_5, %c0_6] : memref<128x128xbf16, #tpu.memory_space<vmem>>, vector<128x128xbf16>
    %c0_7 = arith.constant 0 : index
    %c0_8 = arith.constant 0 : index
    %25 = vector.load %arg5[%c0_7, %c0_8] : memref<1x128xf32, #tpu.memory_space<vmem>>, vector<1x128xf32>
    %cst = arith.constant dense<0.000000e+00> : vector<128x128xf32>
    %26 = tpu.matmul %23, %24, %cst {dimension_numbers = #tpu.dot_dimension_numbers<[1], [0], [0], [1], [0, 0, 1, 1], [], []>} : vector<128x128xbf16>, vector<128x128xbf16>, vector<128x128xf32> -> vector<128x128xf32>
    %27 = vector.broadcast %25 : vector<1x128xf32> to vector<128x128xf32>
    %28 = arith.addf %26, %27 : vector<128x128xf32>
    %29 = arith.truncf %28 : vector<128x128xf32> to vector<128x128xbf16>
    %30 = math.tanh %29 : vector<128x128xbf16>
    %c0_9 = arith.constant 0 : index
    %c0_10 = arith.constant 0 : index
    %31 = vector.load %arg6[%c0_9, %c0_10] : memref<128x128xbf16, #tpu.memory_space<vmem>>, vector<128x128xbf16>
    %c0_11 = arith.constant 0 : index
    %c0_12 = arith.constant 0 : index
    %32 = vector.load %arg7[%c0_11, %c0_12] : memref<1x128xf32, #tpu.memory_space<vmem>>, vector<1x128xf32>
    %cst_13 = arith.constant dense<0.000000e+00> : vector<128x128xf32>
    %33 = tpu.matmul %30, %31, %cst_13 {dimension_numbers = #tpu.dot_dimension_numbers<[1], [0], [0], [1], [0, 0, 1, 1], [], []>} : vector<128x128xbf16>, vector<128x128xbf16>, vector<128x128xf32> -> vector<128x128xf32>
    %34 = vector.broadcast %32 : vector<1x128xf32> to vector<128x128xf32>
    %35 = arith.addf %33, %34 : vector<128x128xf32>
    %36 = arith.truncf %35 : vector<128x128xf32> to vector<128x128xbf16>
    %37 = math.tanh %36 : vector<128x128xbf16>
    %c0_14 = arith.constant 0 : index
    %c0_15 = arith.constant 0 : index
    %38 = vector.load %arg8[%c0_14, %c0_15] : memref<128x128xbf16, #tpu.memory_space<vmem>>, vector<128x128xbf16>
    %c0_16 = arith.constant 0 : index
    %c0_17 = arith.constant 0 : index
    %39 = vector.load %arg9[%c0_16, %c0_17] : memref<1x128xf32, #tpu.memory_space<vmem>>, vector<1x128xf32>
    %cst_18 = arith.constant dense<0.000000e+00> : vector<128x128xf32>
    %40 = tpu.matmul %37, %38, %cst_18 {dimension_numbers = #tpu.dot_dimension_numbers<[1], [0], [0], [1], [0, 0, 1, 1], [], []>} : vector<128x128xbf16>, vector<128x128xbf16>, vector<128x128xf32> -> vector<128x128xf32>
    %41 = vector.broadcast %39 : vector<1x128xf32> to vector<128x128xf32>
    %42 = arith.addf %40, %41 : vector<128x128xf32>
    %43 = arith.truncf %42 : vector<128x128xf32> to vector<128x128xbf16>
    %44 = math.tanh %43 : vector<128x128xbf16>
    %c0_19 = arith.constant 0 : index
    %c0_20 = arith.constant 0 : index
    %45 = vector.load %arg10[%c0_19, %c0_20] : memref<128x128xbf16, #tpu.memory_space<vmem>>, vector<128x128xbf16>
    %c0_21 = arith.constant 0 : index
    %c0_22 = arith.constant 0 : index
    %46 = vector.load %arg11[%c0_21, %c0_22] : memref<1x128xf32, #tpu.memory_space<vmem>>, vector<1x128xf32>
    %cst_23 = arith.constant dense<0.000000e+00> : vector<128x128xf32>
    %47 = tpu.matmul %44, %45, %cst_23 {dimension_numbers = #tpu.dot_dimension_numbers<[1], [0], [0], [1], [0, 0, 1, 1], [], []>} : vector<128x128xbf16>, vector<128x128xbf16>, vector<128x128xf32> -> vector<128x128xf32>
    %48 = vector.broadcast %46 : vector<1x128xf32> to vector<128x128xf32>
    %49 = arith.addf %47, %48 : vector<128x128xf32>
    %50 = arith.truncf %49 : vector<128x128xf32> to vector<128x128xbf16>
    %51 = math.tanh %50 : vector<128x128xbf16>
    %c0_24 = arith.constant 0 : index
    %c0_25 = arith.constant 0 : index
    %52 = vector.load %arg12[%c0_24, %c0_25] : memref<128x128xbf16, #tpu.memory_space<vmem>>, vector<128x128xbf16>
    %c0_26 = arith.constant 0 : index
    %c0_27 = arith.constant 0 : index
    %53 = vector.load %arg13[%c0_26, %c0_27] : memref<1x128xf32, #tpu.memory_space<vmem>>, vector<1x128xf32>
    %cst_28 = arith.constant dense<0.000000e+00> : vector<128x128xf32>
    %54 = tpu.matmul %51, %52, %cst_28 {dimension_numbers = #tpu.dot_dimension_numbers<[1], [0], [0], [1], [0, 0, 1, 1], [], []>} : vector<128x128xbf16>, vector<128x128xbf16>, vector<128x128xf32> -> vector<128x128xf32>
    %55 = vector.broadcast %53 : vector<1x128xf32> to vector<128x128xf32>
    %56 = arith.addf %54, %55 : vector<128x128xf32>
    %57 = arith.truncf %56 : vector<128x128xf32> to vector<128x128xbf16>
    %58 = math.tanh %57 : vector<128x128xbf16>
    %c0_29 = arith.constant 0 : index
    %c0_30 = arith.constant 0 : index
    %59 = vector.load %arg14[%c0_29, %c0_30] : memref<128x128xbf16, #tpu.memory_space<vmem>>, vector<128x128xbf16>
    %c0_31 = arith.constant 0 : index
    %c0_32 = arith.constant 0 : index
    %60 = vector.load %arg15[%c0_31, %c0_32] : memref<1x128xf32, #tpu.memory_space<vmem>>, vector<1x128xf32>
    %cst_33 = arith.constant dense<0.000000e+00> : vector<128x128xf32>
    %61 = tpu.matmul %58, %59, %cst_33 {dimension_numbers = #tpu.dot_dimension_numbers<[1], [0], [0], [1], [0, 0, 1, 1], [], []>} : vector<128x128xbf16>, vector<128x128xbf16>, vector<128x128xf32> -> vector<128x128xf32>
    %62 = vector.broadcast %60 : vector<1x128xf32> to vector<128x128xf32>
    %63 = arith.addf %61, %62 : vector<128x128xf32>
    %64 = arith.truncf %63 : vector<128x128xf32> to vector<128x128xbf16>
    %65 = math.tanh %64 : vector<128x128xbf16>
    %c0_34 = arith.constant 0 : index
    %c0_35 = arith.constant 0 : index
    %66 = vector.load %arg16[%c0_34, %c0_35] : memref<128x128xbf16, #tpu.memory_space<vmem>>, vector<128x128xbf16>
    %c0_36 = arith.constant 0 : index
    %c0_37 = arith.constant 0 : index
    %67 = vector.load %arg17[%c0_36, %c0_37] : memref<1x128xf32, #tpu.memory_space<vmem>>, vector<1x128xf32>
    %c0_38 = arith.constant 0 : index
    %c0_39 = arith.constant 0 : index
    %68 = vector.load %arg18[%c0_38, %c0_39] : memref<128x2xbf16, #tpu.memory_space<vmem>>, vector<128x2xbf16>
    %c0_40 = arith.constant 0 : index
    %c0_41 = arith.constant 0 : index
    %69 = vector.load %arg19[%c0_40, %c0_41] : memref<1x2xf32, #tpu.memory_space<vmem>>, vector<1x2xf32>
    %cst_42 = arith.constant dense<0.000000e+00> : vector<128x128xf32>
    %70 = tpu.matmul %65, %66, %cst_42 {dimension_numbers = #tpu.dot_dimension_numbers<[1], [0], [0], [1], [0, 0, 1, 1], [], []>} : vector<128x128xbf16>, vector<128x128xbf16>, vector<128x128xf32> -> vector<128x128xf32>
    %71 = vector.broadcast %67 : vector<1x128xf32> to vector<128x128xf32>
    %72 = arith.addf %70, %71 : vector<128x128xf32>
    %73 = arith.truncf %72 : vector<128x128xf32> to vector<128x128xbf16>
    %74 = math.tanh %73 : vector<128x128xbf16>
    %cst_43 = arith.constant dense<0.000000e+00> : vector<128x2xf32>
    %75 = tpu.matmul %74, %68, %cst_43 {dimension_numbers = #tpu.dot_dimension_numbers<[1], [0], [0], [1], [0, 0, 1, 1], [], []>} : vector<128x128xbf16>, vector<128x2xbf16>, vector<128x2xf32> -> vector<128x2xf32>
    %76 = vector.broadcast %69 : vector<1x2xf32> to vector<128x2xf32>
    %77 = arith.addf %75, %76 : vector<128x2xf32>
    %78 = tpu.iota {dimensions = array<i32: 1>} : vector<128x2xi32>
    %c1_i32 = arith.constant 1 : i32
    %79 = vector.broadcast %c1_i32 : i32 to vector<128x2xi32>
    %80 = arith.cmpi eq, %78, %79 : vector<128x2xi32>
    %81 = math.exp %77 : vector<128x2xf32>
    %82 = arith.select %80, %81, %77 : vector<128x2xi1>, vector<128x2xf32>
    %c0_44 = arith.constant 0 : index
    %c0_45 = arith.constant 0 : index
    %83 = vector.load %arg20[%c0_44, %c0_45] : memref<128x2xf32, #tpu.memory_space<vmem>>, vector<128x2xf32>
    tpu.vector_store %arg20[%c0_44, %c0_45], %82 {strides = array<i32>} : memref<128x2xf32, #tpu.memory_space<vmem>>, vector<128x2xf32>,
    return
  }
  func.func @transform_0(%arg0: i32) -> (i32, i32) {
    %c0_i32 = arith.constant 0 : i32
    %c0_i32_0 = arith.constant 0 : i32
    return %arg0, %c0_i32 : i32, i32
  }
  func.func @transform_1(%arg0: i32) -> (i32, i32) {
    %c0_i32 = arith.constant 0 : i32
    %c0_i32_0 = arith.constant 0 : i32
    %c0_i32_1 = arith.constant 0 : i32
    return %c0_i32, %c0_i32_0 : i32, i32
  }
  func.func @transform_2(%arg0: i32) -> (i32, i32) {
    %c0_i32 = arith.constant 0 : i32
    %c0_i32_0 = arith.constant 0 : i32
    %c0_i32_1 = arith.constant 0 : i32
    return %c0_i32, %c0_i32_0 : i32, i32
  }
  func.func @transform_3(%arg0: i32) -> (i32, i32) {
    %c0_i32 = arith.constant 0 : i32
    %c0_i32_0 = arith.constant 0 : i32
    %c0_i32_1 = arith.constant 0 : i32
    return %c0_i32, %c0_i32_0 : i32, i32
  }
  func.func @transform_4(%arg0: i32) -> (i32, i32) {
    %c0_i32 = arith.constant 0 : i32
    %c0_i32_0 = arith.constant 0 : i32
    %c0_i32_1 = arith.constant 0 : i32
    return %c0_i32, %c0_i32_0 : i32, i32
  }
  func.func @transform_5(%arg0: i32) -> (i32, i32) {
    %c0_i32 = arith.constant 0 : i32
    %c0_i32_0 = arith.constant 0 : i32
    %c0_i32_1 = arith.constant 0 : i32
    return %c0_i32, %c0_i32_0 : i32, i32
  }
  func.func @transform_6(%arg0: i32) -> (i32, i32) {
    %c0_i32 = arith.constant 0 : i32
    %c0_i32_0 = arith.constant 0 : i32
    %c0_i32_1 = arith.constant 0 : i32
    return %c0_i32, %c0_i32_0 : i32, i32
  }
  func.func @transform_7(%arg0: i32) -> (i32, i32) {
    %c0_i32 = arith.constant 0 : i32
    %c0_i32_0 = arith.constant 0 : i32
    %c0_i32_1 = arith.constant 0 : i32
    return %c0_i32, %c0_i32_0 : i32, i32
  }
  func.func @transform_8(%arg0: i32) -> (i32, i32) {
    %c0_i32 = arith.constant 0 : i32
    %c0_i32_0 = arith.constant 0 : i32
    %c0_i32_1 = arith.constant 0 : i32
    return %c0_i32, %c0_i32_0 : i32, i32
  }
  func.func @transform_9(%arg0: i32) -> (i32, i32) {
    %c0_i32 = arith.constant 0 : i32
    %c0_i32_0 = arith.constant 0 : i32
    %c0_i32_1 = arith.constant 0 : i32
    return %c0_i32, %c0_i32_0 : i32, i32
  }
  func.func @transform_10(%arg0: i32) -> (i32, i32) {
    %c0_i32 = arith.constant 0 : i32
    %c0_i32_0 = arith.constant 0 : i32
    %c0_i32_1 = arith.constant 0 : i32
    return %c0_i32, %c0_i32_0 : i32, i32
  }
  func.func @transform_11(%arg0: i32) -> (i32, i32) {
    %c0_i32 = arith.constant 0 : i32
    %c0_i32_0 = arith.constant 0 : i32
    %c0_i32_1 = arith.constant 0 : i32
    return %c0_i32, %c0_i32_0 : i32, i32
  }
  func.func @transform_12(%arg0: i32) -> (i32, i32) {
    %c0_i32 = arith.constant 0 : i32
    %c0_i32_0 = arith.constant 0 : i32
    %c0_i32_1 = arith.constant 0 : i32
    return %c0_i32, %c0_i32_0 : i32, i32
  }
  func.func @transform_13(%arg0: i32) -> (i32, i32) {
    %c0_i32 = arith.constant 0 : i32
    %c0_i32_0 = arith.constant 0 : i32
    %c0_i32_1 = arith.constant 0 : i32
    return %c0_i32, %c0_i32_0 : i32, i32
  }
  func.func @transform_14(%arg0: i32) -> (i32, i32) {
    %c0_i32 = arith.constant 0 : i32
    %c0_i32_0 = arith.constant 0 : i32
    %c0_i32_1 = arith.constant 0 : i32
    return %c0_i32, %c0_i32_0 : i32, i32
  }
  func.func @transform_15(%arg0: i32) -> (i32, i32) {
    %c0_i32 = arith.constant 0 : i32
    %c0_i32_0 = arith.constant 0 : i32
    %c0_i32_1 = arith.constant 0 : i32
    return %c0_i32, %c0_i32_0 : i32, i32
  }
  func.func @transform_16(%arg0: i32) -> (i32, i32) {
    %c0_i32 = arith.constant 0 : i32
    %c0_i32_0 = arith.constant 0 : i32
    %c0_i32_1 = arith.constant 0 : i32
    return %c0_i32, %c0_i32_0 : i32, i32
  }
  func.func @transform_17(%arg0: i32) -> (i32, i32) {
    %c0_i32 = arith.constant 0 : i32
    %c0_i32_0 = arith.constant 0 : i32
    %c0_i32_1 = arith.constant 0 : i32
    return %c0_i32, %c0_i32_0 : i32, i32
  }
  func.func @transform_18(%arg0: i32) -> (i32, i32) {
    %c0_i32 = arith.constant 0 : i32
    %c0_i32_0 = arith.constant 0 : i32
    %c0_i32_1 = arith.constant 0 : i32
    return %c0_i32, %c0_i32_0 : i32, i32
  }
  func.func @transform_19(%arg0: i32) -> (i32, i32) {
    %c0_i32 = arith.constant 0 : i32
    %c0_i32_0 = arith.constant 0 : i32
    return %arg0, %c0_i32 : i32, i32
  }
}

</mosaic_0001>

<bundles_post_ra>
// kernel: tpu_custom_call.1
= control target key start
LH: loop header
LB: loop body
LE: loop exit
PB: predicated region body
PF: predicated region fallthrough
CT: control target
= control target key end

     0   :  { %s4039_s0 = inlined_call_operand.vmem [shape: f32[256,3], index: 0, kind: input, shape index: {}]   ;;  %s4040_s1 = inlined_call_operand.vmem [shape: f32[3,128], index: 1, kind: input, shape index: {}]   ;;  %s4041_s2 = inlined_call_operand.vmem [shape: f32[1,128], index: 2, kind: input, shape index: {}]   ;;  %s4042_s3 = inlined_call_operand.vmem [shape: bf16[128,128], index: 3, kind: input, shape index: {}]   ;;  %s4043_s4 = inlined_call_operand.vmem [shape: f32[1,128], index: 4, kind: input, shape index: {}]   ;;  %s4044_s5 = inlined_call_operand.vmem [shape: bf16[128,128], index: 5, kind: input, shape index: {}]   ;;  %s4045_s6 = inlined_call_operand.vmem [shape: f32[1,128], index: 6, kind: input, shape index: {}]   ;;  %s4046_s7 = inlined_call_operand.vmem [shape: bf16[128,128], index: 7, kind: input, shape index: {}]   ;;  %s4047_s8 = inlined_call_operand.vmem [shape: f32[1,128], index: 8, kind: input, shape index: {}]   ;;  %s4048_s9 = inlined_call_operand.vmem [shape: bf16[128,128], index: 9, kind: input, shape index: {}]   ;;  %s4049_s10 = inlined_call_operand.vmem [shape: f32[1,128], index: 10, kind: input, shape index: {}]   ;;  %s4050_s11 = inlined_call_operand.vmem [shape: bf16[128,128], index: 11, kind: input, shape index: {}]   ;;  %s4051_s12 = inlined_call_operand.vmem [shape: f32[1,128], index: 12, kind: input, shape index: {}]   ;;  %s4052_s13 = inlined_call_operand.hbm [shape: bf16[128,128], index: 13, kind: input, shape index: {}]   ;;  %s4053_s14 = inlined_call_operand.vmem [shape: f32[1,128], index: 14, kind: input, shape index: {}]   ;;  %s4054_s15 = inlined_call_operand.hbm [shape: bf16[128,128], index: 15, kind: input, shape index: {}]   ;;  %s4055_s16 = inlined_call_operand.vmem [shape: f32[1,128], index: 16, kind: input, shape index: {}]   ;;  %s4056_s17 = inlined_call_operand.vmem [shape: bf16[128,2], index: 17, kind: input, shape index: {}]   ;;  %s4057_s18 = inlined_call_operand.vmem [shape: f32[1,2], index: 18, kind: input, shape index: {}]   ;;  %s4058_s19 = inlined_call_operand.vmem [shape: f32[256,2], index: 19, kind: output, shape index: {}]  }
   0x1   :  { %4064 = sst [smem:[#allocation8_spill]] %s4039_s0 }
   0x2   :  { %4065 = sst [smem:[#allocation9_spill]] %s4040_s1 }
   0x3   :  { %4066 = sst [smem:[#allocation10_spill]] %s4041_s2 }
   0x4   :  { %4067 = sst [smem:[#allocation11_spill]] %s4042_s3 }
   0x5   :  { %4068 = sst [smem:[#allocation12_spill]] %s4057_s18 }
   0x6   :  { %4069 = sst [smem:[#allocation13_spill]] %s4058_s19 }
   0x7   :  { %24 = vsyncpa [#allocation3], 0 }
   0x8   :  { %25 = vsyncpa [#allocation5], 0  ;;  %s3527_s0 = smov 0  }
   0x9 LB: > { %s4063_s30 = sadd.s32 4294967295, %s3418_s0   ;;  %p2597_p0 = scmp.ge.s32.totalorder %s3418_s0, 1  ;;  %s3418_s0 = sphi %s3527_s0, %s31_s0  }
   0xa   : > { %p466_p1 = scmp.lt.s32.totalorder %s3418_s0, 3  ;;  %s3420_s20 = smov [#allocation2]  }
   0xb   : > { %s514_s21 = sshll.u32 %s3420_s20, 4  ;;  %p3541_p3 = scmp.eq.s32.totalorder %s4063_s30, 0  ;;  %s515_s21 = int_to_ptr.vmem [resolvable:$true] %s514_s21 }
   0xc   : > { %p3535_p2 = pnand %p2597_p0, %p466_p1  ;;  %s3421_s2 = smov [#allocation4]  }
   0xd   : > { %s4071_s22 = scalar_select %p3541_p3, 1, 0 }
   0xe   : > { %s4070_s1 = scalar_select %p3535_p2, 1, 0 }
   0xf   : > { %p3075_p4 = pneg %p3535_p2  ;;  %s530_s23 = sshll.u32 %s3421_s2, 4  ;;  %s3553_s23 = int_to_ptr.vmem [resolvable:$true] %s530_s23 }
  0x10   : > { %s3348_s26 = scalar_lea.hbm %s4052_s13, 1024 }
  0x11   : > { %p3549_p5 = pnand %p3541_p3, %p3075_p4  ;;  %p3349_p6 = scmp.ne.s32.totalorder %s4052_s13, %s3348_s26 }
  0x12   : > { %p3355_p10 = scmp.lt.u32.totalorder %s3348_s26, %s4052_s13 }
  0x13   : > { %p3350_p7 = pneg %p3549_p5 }
  0x15   : > { %p3351_p8 = pnand %p3350_p7, %p3349_p6 }
  0x17   : > { %p3352_p9 = pneg %p3351_p8 }
  0x19   : > { %p3357_p11 = pnand %p3355_p10, %p3352_p9 }
  0x1b   : > { %3360 = shalt.err (!%p3357_p11)
}
  0x1c   : > { %s3361_s2 = scalar_lea.vmem %s515_s21, 1024  ;;  %p3369_p1 = scmp.lt.s32.totalorder %s515_s21, %s515_s21 }
  0x1d   : > { %p3362_p12 = scmp.ne.s32.totalorder %s515_s21, %s3361_s2  ;;  %p3370_p4 = scmp.lt.s32.totalorder %s3361_s2, %s3361_s2 }
  0x1f   : > { %p3364_p13 = pnand %p3362_p12, %p3350_p7  ;;  %p3371_p3 = por %p3370_p4, %p3369_p1 }
  0x21   : > { %p3365_p0 = pneg %p3364_p13 }
  0x23   : > { %p3372_p2 = pnand %p3371_p3, %p3365_p0 }
  0x25   : > { %3375 = shalt.err (!%p3372_p2)
}
  0x26   : > { %s3422_s25 = smov 64   ;;  %s3423_s3 = smov 4  }
  0x27   : > { %3078 = dma.hbm_to_vmem [thread:$0]  (!%p3549_p5), %s4052_s13, 1024, %s515_s21, [#allocation3], %s3422_s25, %s3422_s25, %s3423_s3  }
  0x28   : > { %s3376_s20 = scalar_lea.hbm %s4054_s15, 1024 }
  0x29   : > { %p3377_p6 = scmp.ne.s32.totalorder %s4054_s15, %s3376_s20  ;;  %p3383_p8 = scmp.lt.u32.totalorder %s3376_s20, %s4054_s15 }
  0x2b   : > { %p3379_p2 = pnand %p3377_p6, %p3350_p7 }
  0x2d   : > { %p3380_p3 = pneg %p3379_p2 }
  0x2f   : > { %p3385_p9 = pnand %p3383_p8, %p3380_p3 }
  0x31   : > { %3388 = shalt.err (!%p3385_p9)
}
  0x32   : > { %s3389_s21 = scalar_lea.vmem %s3553_s23, 1024  ;;  %p3397_p13 = scmp.lt.s32.totalorder %s3553_s23, %s3553_s23 }
  0x33   : > { %p3390_p10 = scmp.ne.s32.totalorder %s3553_s23, %s3389_s21  ;;  %p3398_p0 = scmp.lt.s32.totalorder %s3389_s21, %s3389_s21 }
  0x35   : > { %p3392_p11 = pnand %p3390_p10, %p3350_p7  ;;  %p3399_p1 = por %p3398_p0, %p3397_p13 }
  0x37   : > { %p3393_p12 = pneg %p3392_p11 }
  0x39   : > { %p3400_p4 = pnand %p3399_p1, %p3393_p12 }
  0x3b   : > { %3403 = shalt.err (!%p3400_p4)
}
  0x3c   : > { %3081 = dma.hbm_to_vmem [thread:$0]  (!%p3549_p5), %s4054_s15, 1024, %s3553_s23, [#allocation5], %s3422_s25, %s3422_s25, %s3423_s3  }
  0x3d   : > { %p4073_p6 = scmp.ne.s32.totalorder %s4070_s1, 0 }
  0x3e   : > { %p4074_p2 = scmp.ne.s32.totalorder (!%p4073_p6), %s4071_s22, 0 }
  0x3f   : > { %564 = sbr.rel (%p4073_p6) target bundleno = 2215 (0x8a7), region = 96 }
  0x46   : > { %3409 = dma.done.wait (%p4074_p2), [#allocation3], 1024  }
  0x47   : > { %3411 = vsyncadd (%p4074_p2), [#allocation3], 4294966272 }
  0x48   : > { %3413 = dma.done.wait (%p4074_p2), [#allocation5], 1024  }
  0x49   : > { %3415 = vsyncadd (%p4074_p2), [#allocation5], 4294966272  ;;  %s4075_s30 = sadd.s32 4294967295, %s3418_s0   ;;  %v3424_v0 = vmov 2   ;;  %v3425_v1 = vmov 1   ;;  %s4076_s22 = sld [smem:[#allocation8_spill]]  ;;  %v735_v29 = vlaneseq }
  0x4a   : > { %s2604_s24 = sshll.u32 %s4075_s30, 4  ;;  %3105 = vset.pattern.permute.xlu0 %v3424_v0  ;;  %3101 = vset.pattern.permute.xlu1 %v3425_v1  ;;  %v3426_v8 = vmov 0   ;;  %s4077_s28 = sld [smem:[#allocation11_spill]]  ;;  %v3132_v55 = vld [vmem:[%s4044_s5] sm:$0xff]   ;;  %v3133_v56 = vld [vmem:[%s4044_s5 + $0x8] sm:$0xff]   ;;  %v3134_v63 = vld [vmem:[%s4044_s5 + $0x10] sm:$0xff]  }
  0x4b   : > { %p625_p5 = scmp.lt.s32.totalorder %s2604_s24, 31  ;;  %v736_v32 = vshrl.u32 %v735_v29, 7  ;;  %s4078_s21 = sld [smem:[#allocation9_spill]]  ;;  %2843 = vmatprep.subr.bf16.mxu1 %v3132_v55  ;;  %vm2500_vm1 = vcmask 15360  }
  0x4c   : > { %s4079_s26 = sld [smem:[#allocation10_spill]]  ;;  %2844 = vmatpush3.bf16.msra.mxu1 %v3132_v55  ;;  %s4080_s29 = sld [smem:[#allocation12_spill]] }
  0x4d   : > { %s4083_s24 = smov (!%p625_p5, %s2604_s24), 31  ;;  %v821_v35 = vsub.s32 1, %v736_v32  ;;  %v921_v37 = vsub.s32 2, %v736_v32  ;;  %v737_v38 = vsub.s32 0, %v736_v32  ;;  %2845 = vmatprep.subr.bf16.mxu1 %v3133_v56  ;;  %s4081_s2 = sld [smem:[#allocation13_spill]] }
  0x4e   : > { %s2605_s1 = sshll.u32 %s4083_s24, 3 }
  0x4f   : > { %s3624_s3 = scalar_lea.vmem %s4076_s22, %s2605_s1 }
  0x50   : > { %v638_v2 = vld [vmem:[%s3624_s3 + $0x8] sm:$0xff]  ;;  %v637_v3 = vld [vmem:[%s3624_s3] sm:$0xff]  ;;  %v644_v5 = vld [vmem:[%s3624_s3 + $0x38] sm:$0xff]  ;;  %2846 = vmatpush3.bf16.msra.mxu1 %v3133_v56 }
  0x51   : > { %860 = vperm.xlu0 %3105, %v638_v2   ;;  %756 = vperm.xlu1 %3101, %v637_v3   ;;  %v641_v4 = vld [vmem:[%s3624_s3 + $0x20] sm:$0xff]  ;;  %v640_v6 = vld [vmem:[%s3624_s3 + $0x18] sm:$0xff]  ;;  %v3632_v7 = vld [vmem:[%s3624_s3 + $0x48] sm:$0xff] }
  0x52   : > { %v639_v9 = vld [vmem:[%s3624_s3 + $0x10] sm:$0xff]  ;;  %v642_v10 = vld [vmem:[%s3624_s3 + $0x28] sm:$0xff]  ;;  %v3124_v12 = vld [vmem:[%s4077_s28] sm:$0xff]   ;;  %2847 = vmatprep.subr.bf16.mxu1 %v3134_v63 }
  0x53   : > { %v3643_v11 = vld [vmem:[%s3624_s3 + $0x50] sm:$0xff]  ;;  %2811 = vmatprep.subr.bf16.mxu0 %v3124_v12  ;;  %v3651_v13 = vld [vmem:[%s3624_s3 + $0x60] sm:$0xff]  ;;  %v3125_v15 = vld [vmem:[%s4077_s28 + $0x8] sm:$0xff]  }
  0x54   : > { %2812 = vmatpush3.bf16.msra.mxu0 %v3124_v12  ;;  %v643_v14 = vld [vmem:[%s3624_s3 + $0x30] sm:$0xff]  ;;  %v3127_v17 = vld [vmem:[%s4077_s28 + $0x18] sm:$0xff]   ;;  %v3128_v18 = vld [vmem:[%s4077_s28 + $0x20] sm:$0xff]   ;;  %2848 = vmatpush3.bf16.msra.mxu1 %v3134_v63 }
  0x55   : > { %872 = vperm.xlu0 %3105, %v641_v4   ;;  %760 = vperm.xlu1 %3101, %v638_v2   ;;  %v3126_v16 = vld [vmem:[%s4077_s28 + $0x10] sm:$0xff]   ;;  %v3129_v19 = vld [vmem:[%s4077_s28 + $0x28] sm:$0xff]   ;;  %v645_v22 = vld [vmem:[%s3624_s3 + $0x40] sm:$0xff] }
  0x56   : > { %2813 = vmatprep.subr.bf16.mxu0 %v3125_v15  ;;  %v3130_v20 = vld [vmem:[%s4077_s28 + $0x30] sm:$0xff]   ;;  %v650_v21 = vld [vmem:[%s3624_s3 + $0x68] sm:$0xff]  ;;  %v3131_v23 = vld [vmem:[%s4077_s28 + $0x38] sm:$0xff]  }
  0x57   : > { %v651_v24 = vld [vmem:[%s3624_s3 + $0x70] sm:$0xff]  ;;  %v652_v25 = vld [vmem:[%s3624_s3 + $0x78] sm:$0xff]  ;;  %v653_v36 = vld [vmem:[%s4078_s21] sm:$0x7]  ;;  %s3959_s21 = scalar_lea.vmem %s4081_s2, %s2605_s1 }
  0x58   : > { %2814 = vmatpush3.bf16.msra.mxu0 %v3125_v15  ;;  %v648_v26 = vld [vmem:[%s3624_s3 + $0x58] sm:$0xff]  ;;  %v3712_v40 = vrot.slane %v653_v36, %v821_v35  ;;  %v3714_v42 = vrot.slane %v653_v36, %v921_v37  ;;  %v3716_v43 = vrot.slane %v653_v36, %v737_v38  ;;  %v3733_v59 = vld [vmem:[%s4079_s26] ss:$0 sm:$0xff] }
  0x59   : > { %884 = vperm.xlu0 %3105, %v644_v5   ;;  %3102 = vset.pattern.permute.xlu1 %v3426_v8 }
  0x5a   : > { %672 = vperm.xlu1 %3102, %v640_v6   ;;  %2815 = vmatprep.subr.bf16.mxu0 %v3126_v16 }
  0x5c   : > { %2816 = vmatpush3.bf16.msra.mxu0 %v3126_v16 }
  0x5d   : > { %892 = vperm.xlu0 %3105, %v3632_v7   ;;  %2817 = vmatprep.subr.bf16.mxu0 %v3127_v17 }
  0x5e   : > { %3103 = vset.pattern.permute.xlu1 %v3425_v1 }
  0x5f   : > { %768 = vperm.xlu1 %3103, %v640_v6  }
  0x60   : > { %2818 = vmatpush3.bf16.msra.mxu0 %v3127_v17 }
  0x61   : > { %3116 = vset.pattern.permute.xlu0 %v3426_v8  ;;  %2819 = vmatprep.subr.bf16.mxu0 %v3128_v18 }
  0x62   : > { %657 = vperm.xlu0 %3116, %v637_v3  }
  0x63   : > { %3104 = vset.pattern.permute.xlu1 %v3424_v0 }
  0x64   : > { %856 = vperm.xlu1 %3104, %v637_v3   ;;  %2820 = vmatpush3.bf16.msra.mxu0 %v3128_v18 }
  0x65   : > { %2821 = vmatprep.subr.bf16.mxu0 %v3129_v19 }
  0x66   : > { %662 = vperm.xlu0 %3116, %v638_v2  }
  0x68   : > { %864 = vperm.xlu1 %3104, %v639_v9   ;;  %2822 = vmatpush3.bf16.msra.mxu0 %v3129_v19 }
  0x69   : > { %2823 = vmatprep.subr.bf16.mxu0 %v3130_v20 }
  0x6a   : > { %667 = vperm.xlu0 %3116, %v639_v9  }
  0x6c   : > { %868 = vperm.xlu1 %3104, %v640_v6   ;;  %2824 = vmatpush3.bf16.msra.mxu0 %v3130_v20 }
  0x6d   : > { %2825 = vmatprep.subr.bf16.mxu0 %v3131_v23 }
  0x6e   : > { %677 = vperm.xlu0 %3116, %v641_v4  }
  0x70   : > { %3106 = vset.pattern.permute.xlu1 %v3426_v8  ;;  %2826 = vmatpush3.bf16.msra.mxu0 %v3131_v23 }
  0x71   : > { %682 = vperm.xlu1 %3106, %v642_v10  }
  0x72   : > { %702 = vperm.xlu0 %3116, %v3632_v7  }
  0x75   : > { %3107 = vset.pattern.permute.xlu1 %v3425_v1 }
  0x76   : > { %707 = vperm.xlu0 %3116, %v3643_v11   ;;  %772 = vperm.xlu1 %3107, %v641_v4  }
  0x7a   : > { %717 = vperm.xlu0 %3116, %v3651_v13   ;;  %3108 = vset.pattern.permute.xlu1 %v3426_v8 }
  0x7b   : > { %687 = vperm.xlu1 %3108, %v643_v14  }
  0x7e   : > { %3117 = vset.pattern.permute.xlu0 %v3425_v1 }
  0x7f   : > { %764 = vperm.xlu0 %3117, %v639_v9   ;;  %692 = vperm.xlu1 %3108, %v644_v5  }
  0x83   : > { %776 = vperm.xlu0 %3117, %v642_v10   ;;  %3109 = vset.pattern.permute.xlu1 %v3425_v1 }
  0x84   : > { %784 = vperm.xlu1 %3109, %v644_v5  }
  0x87   : > { %780 = vperm.xlu0 %3117, %v643_v14  }
  0x88   : > { %3110 = vset.pattern.permute.xlu1 %v3424_v0 }
  0x89   : > { %876 = vperm.xlu1 %3110, %v642_v10  }
  0x8b   : > { %796 = vperm.xlu0 %3117, %v3643_v11  }
  0x8d   : > { %880 = vperm.xlu1 %3110, %v643_v14  }
  0x8f   : > { %808 = vperm.xlu0 %3117, %v650_v21  }
  0x91   : > { %3111 = vset.pattern.permute.xlu1 %v3426_v8 }
  0x92   : > { %697 = vperm.xlu1 %3111, %v645_v22  }
  0x93   : > { %812 = vperm.xlu0 %3117, %v651_v24  }
  0x96   : > { %3112 = vset.pattern.permute.xlu1 %v3425_v1 }
  0x97   : > { %788 = vperm.xlu1 %3112, %v645_v22   ;;  %3122 = vset.pattern.permute.xlu0 %v3424_v0 }
  0x98   : > { %904 = vperm.xlu0 %3122, %v3651_v13  }
  0x9b   : > { %792 = vperm.xlu1 %3112, %v3632_v7  }
  0x9c   : > { %916 = vperm.xlu0 %3122, %v652_v25  }
  0x9f   : > { %3113 = vset.pattern.permute.xlu1 %v3426_v8 }
  0xa0   : > { %712 = vperm.xlu1 %3113, %v648_v26  }
  0xa4   : > { %3114 = vset.pattern.permute.xlu1 %v3425_v1 }
  0xa5   : > { %800 = vperm.xlu1 %3114, %v648_v26  }
  0xa9   : > { %3115 = vset.pattern.permute.xlu1 %v3424_v0 }
  0xaa   : > { %888 = vperm.xlu1 %3115, %v645_v22  }
  0xae   : > { %896 = vperm.xlu1 %3115, %v3643_v11  }
  0xb2   : > { %900 = vperm.xlu1 %3115, %v648_v26  }
  0xb6   : > { %3118 = vset.pattern.permute.xlu1 %v3426_v8 }
  0xb7   : > { %722 = vperm.xlu1 %3118, %v650_v21  }
  0xbb   : > { %3119 = vset.pattern.permute.xlu1 %v3425_v1 }
  0xbc   : > { %804 = vperm.xlu1 %3119, %v3651_v13  }
  0xc0   : > { %3120 = vset.pattern.permute.xlu1 %v3426_v8 }
  0xc1   : > { %727 = vperm.xlu1 %3120, %v651_v24  }
  0xc5   : > { %732 = vperm.xlu1 %3120, %v652_v25  }
  0xc9   : > { %3121 = vset.pattern.permute.xlu1 %v3425_v1 }
  0xca   : > { %816 = vperm.xlu1 %3121, %v652_v25  }
  0xce   : > { %3123 = vset.pattern.permute.xlu1 %v3424_v0 }
  0xcf   : > { %908 = vperm.xlu1 %3123, %v650_v21  }
  0xd0   : > { %v757_v27 = vpop.permute.xlu1 %756  ;;  %v861_v28 = vpop.permute.xlu0 %860 }
  0xd1   : > { %v823_v45 = vmul.f32 %v3712_v40, %v757_v27  ;;  %v924_v51 = vmul.f32 %v3714_v42, %v861_v28 }
  0xd3   : > { %912 = vperm.xlu1 %3123, %v651_v24  }
  0xd4   : > { %v761_v30 = vpop.permute.xlu1 %760  ;;  %v3702_v31 = vpop.permute.xlu0 %872 }
  0xd5   : > { %v824_v52 = vmul.f32 %v3712_v40, %v761_v30  ;;  %v927_v27 = vmul.f32 %v3714_v42, %v3702_v31 }
  0xd8   : > { %v3705_v33 = vpop.permute.xlu0 %884 }
  0xd9   : > { %v673_v34 = vpop.permute.xlu1 %672 }
  0xda   : > { %v742_v12 = vmul.f32 %v3716_v43, %v673_v34 }
  0xdc   : > { %v3710_v39 = vpop.permute.xlu0 %892 }
  0xde   : > { %v769_v41 = vpop.permute.xlu1 %768 }
  0xdf   : > { %v826_v11 = vmul.f32 %v3712_v40, %v769_v41 }
  0xe1   : > { %v658_v44 = vpop.permute.xlu0 %657  ;;  %v842_v17 = vadd.f32 %v826_v11, %v742_v12 }
  0xe2   : > { %v739_v46 = vmul.f32 %v3716_v43, %v658_v44  ;;  %v930_v44 = vmul.f32 %v3714_v42, %v3705_v33 }
  0xe3   : > { %v857_v47 = vpop.permute.xlu1 %856 }
  0xe4   : > { %v839_v48 = vadd.f32 %v823_v45, %v739_v46  ;;  %v923_v49 = vmul.f32 %v3714_v42, %v857_v47 }
  0xe5   : > { %v663_v50 = vpop.permute.xlu0 %662 }
  0xe6   : > { %v740_v53 = vmul.f32 %v3716_v43, %v663_v50  ;;  %v939_v57 = vadd.f32 %v923_v49, %v839_v48 }
  0xe7   : > { %v865_v54 = vpop.permute.xlu1 %864 }
  0xe8   : > { %v840_v58 = vadd.f32 %v824_v52, %v740_v53  ;;  %v961_v0 = vadd.f32 %v3733_v59, %v939_v57  ;;  %v925_v21 = vmul.f32 %v3714_v42, %v865_v54 }
  0xe9   : > { %v668_v60 = vpop.permute.xlu0 %667 }
  0xea   : > { %v940_v61 = vadd.f32 %v924_v51, %v840_v58  ;;  %v741_v13 = vmul.f32 %v3716_v43, %v668_v60 }
  0xeb   : > { %v869_v62 = vpop.permute.xlu1 %868 }
  0xec   : > { %v962_v1 = vadd.f32 %v3733_v59, %v940_v61  ;;  %v926_v14 = vmul.f32 %v3714_v42, %v869_v62 }
  0xed   : > { %v678_v2 = vpop.permute.xlu0 %677 }
  0xee   : > { %v977_v3 = vpack.c.bf16 %v962_v1, %v961_v0  ;;  %v743_v19 = vmul.f32 %v3716_v43, %v678_v2  ;;  %v942_v22 = vadd.f32 %v926_v14, %v842_v17  ;;  %v932_v14 = vmul.f32 %v3714_v42, %v3710_v39 }
  0xf0   : > { %v683_v4 = vpop.permute.xlu1 %682  ;;  %3188 = vtanh.bf16 %v977_v3  ;;  %v964_v32 = vadd.f32 %v3733_v59, %v942_v22 }
  0xf1   : > { %v3740_v5 = vpop.permute.xlu0 %702  ;;  %v744_v36 = vmul.f32 %v3716_v43, %v683_v4 }
  0xf5   : > { %v773_v6 = vpop.permute.xlu1 %772  ;;  %v3742_v7 = vpop.permute.xlu0 %707 }
  0xf6   : > { %v827_v20 = vmul.f32 %v3712_v40, %v773_v6 }
  0xf8   : > { %v843_v28 = vadd.f32 %v827_v20, %v743_v19 }
  0xf9   : > { %v3744_v8 = vpop.permute.xlu0 %717 }
  0xfa   : > { %v688_v9 = vpop.permute.xlu1 %687  ;;  %v943_v45 = vadd.f32 %v927_v27, %v843_v28 }
  0xfb   : > { %v3189_v10 = vpop.eup %3188  ;;  %v745_v50 = vmul.f32 %v3716_v43, %v688_v9 }
  0xfc   : > { %2827 = vmatprep.mubr.bf16.mxu0 %v3189_v10  ;;  %v965_v52 = vadd.f32 %v3733_v59, %v943_v45  ;;  %v748_v10 = vmul.f32 %v3716_v43, %v3740_v5 }
  0xfe   : > { %v765_v15 = vpop.permute.xlu0 %764  ;;  %v693_v16 = vpop.permute.xlu1 %692 }
  0xff   : > { %v825_v18 = vmul.f32 %v3712_v40, %v765_v15  ;;  %v746_v41 = vmul.f32 %v3716_v43, %v693_v16 }
 0x101   : > { %v841_v23 = vadd.f32 %v825_v18, %v741_v13 }
 0x102   : > { %v777_v24 = vpop.permute.xlu0 %776 }
 0x103   : > { %v941_v25 = vadd.f32 %v925_v21, %v841_v23  ;;  %v785_v26 = vpop.permute.xlu1 %784  ;;  %v828_v30 = vmul.f32 %v3712_v40, %v777_v24  ;;  %v749_v21 = vmul.f32 %v3716_v43, %v3742_v7 }
 0x104   : > { %v830_v35 = vmul.f32 %v3712_v40, %v785_v26 }
 0x105   : > { %v963_v34 = vadd.f32 %v3733_v59, %v941_v25  ;;  %v844_v31 = vadd.f32 %v828_v30, %v744_v36 }
 0x106   : > { %v781_v37 = vpop.permute.xlu0 %780  ;;  %v846_v47 = vadd.f32 %v830_v35, %v746_v41 }
 0x107   : > { %v978_v38 = vpack.c.bf16 %v964_v32, %v963_v34  ;;  %v829_v48 = vmul.f32 %v3712_v40, %v781_v37 }
 0x108   : > { %v877_v46 = vpop.permute.xlu1 %876  ;;  %v946_v54 = vadd.f32 %v930_v44, %v846_v47 }
 0x109   : > { %3190 = vtanh.bf16 %v978_v38  ;;  %v928_v49 = vmul.f32 %v3714_v42, %v877_v46  ;;  %v845_v55 = vadd.f32 %v829_v48, %v745_v50 }
 0x10a   : > { %v968_v60 = vadd.f32 %v3733_v59, %v946_v54  ;;  %v797_v16 = vpop.permute.xlu0 %796 }
 0x10b   : > { %v944_v51 = vadd.f32 %v928_v49, %v844_v31  ;;  %v833_v5 = vmul.f32 %v3712_v40, %v797_v16 }
 0x10c   : > { %v881_v53 = vpop.permute.xlu1 %880 }
 0x10d   : > { %v966_v56 = vadd.f32 %v3733_v59, %v944_v51  ;;  %v929_v33 = vmul.f32 %v3714_v42, %v881_v53  ;;  %v849_v27 = vadd.f32 %v833_v5, %v749_v21  ;;  %v751_v53 = vmul.f32 %v3716_v43, %v3744_v8  ;;  %v3138_v21 = vld [vmem:[%s4044_s5 + $0x30] sm:$0xff]   ;;  %v3139_v5 = vld [vmem:[%s4044_s5 + $0x38] sm:$0xff]  }
 0x10e   : > { %v809_v46 = vpop.permute.xlu0 %808 }
 0x10f   : > { %v979_v57 = vpack.c.bf16 %v966_v56, %v965_v52  ;;  %v945_v58 = vadd.f32 %v929_v33, %v845_v55  ;;  %v836_v33 = vmul.f32 %v3712_v40, %v809_v46 }
 0x111   : > { %3192 = vtanh.bf16 %v979_v57  ;;  %v967_v61 = vadd.f32 %v3733_v59, %v945_v58  ;;  %v698_v62 = vpop.permute.xlu1 %697 }
 0x112   : > { %v747_v15 = vmul.f32 %v3716_v43, %v698_v62  ;;  %v813_v48 = vpop.permute.xlu0 %812 }
 0x113   : > { %v980_v63 = vpack.c.bf16 %v968_v60, %v967_v61 }
 0x114   : > { %v3191_v0 = vpop.eup %3190 }
 0x115   : > { %3194 = vtanh.bf16 %v980_v63  ;;  %2828 = vmatmul.mubr.bf16.vlgmr.msra.gmra.mrb[0].mxu0 %v3191_v0 }
 0x116   : > { %v789_v1 = vpop.permute.xlu1 %788 }
 0x117   : > { %v831_v12 = vmul.f32 %v3712_v40, %v789_v1  ;;  %v905_v52 = vpop.permute.xlu0 %904 }
 0x118   : > { %v935_v56 = vmul.f32 %v3714_v42, %v905_v52 }
 0x119   : > { %v847_v18 = vadd.f32 %v831_v12, %v747_v15 }
 0x11a   : > { %v793_v2 = vpop.permute.xlu1 %792 }
 0x11b   : > { %v832_v9 = vmul.f32 %v3712_v40, %v793_v2  ;;  %v917_v60 = vpop.permute.xlu0 %916 }
 0x11c   : > { %v3193_v3 = vpop.eup %3192  ;;  %v938_v63 = vmul.f32 %v3714_v42, %v917_v60 }
 0x11d   : > { %2831 = vmatprep.mubr.bf16.mxu0 %v3193_v3  ;;  %v848_v13 = vadd.f32 %v832_v9, %v748_v10 }
 0x11f   : > { %v713_v4 = vpop.permute.xlu1 %712  ;;  %v948_v19 = vadd.f32 %v932_v14, %v848_v13 }
 0x120   : > { %v3195_v6 = vpop.eup %3194  ;;  %v750_v28 = vmul.f32 %v3716_v43, %v713_v4  ;;  %v837_v4 = vmul.f32 %v3712_v40, %v813_v48 }
 0x121   : > { %2832 = vmatmul.mubr.bf16.gmra.mrb[4].mxu0 %v3195_v6  ;;  %v970_v24 = vadd.f32 %v3733_v59, %v948_v19 }
 0x124   : > { %v801_v11 = vpop.permute.xlu1 %800 }
 0x125   : > { %v834_v25 = vmul.f32 %v3712_v40, %v801_v11 }
 0x127   : > { %v850_v34 = vadd.f32 %v834_v25, %v750_v28 }
 0x129   : > { %v889_v17 = vpop.permute.xlu1 %888 }
 0x12a   : > { %v931_v20 = vmul.f32 %v3714_v42, %v889_v17 }
 0x12c   : > { %v947_v22 = vadd.f32 %v931_v20, %v847_v18  ;;  %v3135_v20 = vld [vmem:[%s4044_s5 + $0x18] sm:$0xff]  }
 0x12d   : > { %v897_v23 = vpop.permute.xlu1 %896  ;;  %2849 = vmatprep.subr.bf16.mxu1 %v3135_v20 }
 0x12e   : > { %v969_v39 = vadd.f32 %v3733_v59, %v947_v22  ;;  %v933_v26 = vmul.f32 %v3714_v42, %v897_v23  ;;  %2850 = vmatpush3.bf16.msra.mxu1 %v3135_v20  ;;  %v3140_v22 = vld [vmem:[%s4046_s7] sm:$0xff]   ;;  %v3141_v23 = vld [vmem:[%s4046_s7 + $0x8] sm:$0xff]  }
 0x12f   : > { %2875 = vmatprep.subr.bf16.mxu0 %v3140_v22  ;;  %v3149_v20 = vld [vmem:[%s4048_s9 + $0x8] sm:$0xff]  }
 0x130   : > { %v981_v30 = vpack.c.bf16 %v970_v24, %v969_v39  ;;  %v949_v7 = vadd.f32 %v933_v26, %v849_v27  ;;  %2876 = vmatpush3.bf16.msra.mxu0 %v3140_v22  ;;  %v3142_v24 = vld [vmem:[%s4046_s7 + $0x10] sm:$0xff]   ;;  %v2609_v39 = vld [vmem:[%s4043_s4] ss:$0 sm:$0xff] }
 0x131   : > { %v901_v32 = vpop.permute.xlu1 %900  ;;  %2877 = vmatprep.subr.bf16.mxu0 %v3141_v23 }
 0x132   : > { %3196 = vtanh.bf16 %v981_v30  ;;  %v934_v35 = vmul.f32 %v3714_v42, %v901_v32  ;;  %v971_v37 = vadd.f32 %v3733_v59, %v949_v7 }
 0x134   : > { %v950_v36 = vadd.f32 %v934_v35, %v850_v34  ;;  %2878 = vmatpush3.bf16.msra.mxu0 %v3141_v23 }
 0x135   : > { %2879 = vmatprep.subr.bf16.mxu0 %v3142_v24 }
 0x136   : > { %v972_v38 = vadd.f32 %v3733_v59, %v950_v36  ;;  %v723_v41 = vpop.permute.xlu1 %722 }
 0x137   : > { %v752_v57 = vmul.f32 %v3716_v43, %v723_v41 }
 0x138   : > { %v982_v44 = vpack.c.bf16 %v972_v38, %v971_v37  ;;  %2880 = vmatpush3.bf16.msra.mxu0 %v3142_v24 }
 0x139   : > { %v852_v1 = vadd.f32 %v836_v33, %v752_v57 }
 0x13a   : > { %3198 = vtanh.bf16 %v982_v44 }
 0x13b   : > { %v805_v45 = vpop.permute.xlu1 %804 }
 0x13c   : > { %v835_v51 = vmul.f32 %v3712_v40, %v805_v45 }
 0x13d   : > { %v3197_v31 = vpop.eup %3196 }
 0x13e   : > { %2835 = vmatprep.mubr.bf16.mxu0 %v3197_v31  ;;  %v851_v55 = vadd.f32 %v835_v51, %v751_v53 }
 0x140   : > { %v728_v47 = vpop.permute.xlu1 %727  ;;  %v951_v62 = vadd.f32 %v935_v56, %v851_v55 }
 0x141   : > { %v753_v8 = vmul.f32 %v3716_v43, %v728_v47 }
 0x142   : > { %v973_v9 = vadd.f32 %v3733_v59, %v951_v62 }
 0x143   : > { %v853_v11 = vadd.f32 %v837_v4, %v753_v8 }
 0x144   : > { %v733_v49 = vpop.permute.xlu1 %732 }
 0x145   : > { %v3199_v50 = vpop.eup %3198  ;;  %v754_v61 = vmul.f32 %v3716_v43, %v733_v49 }
 0x146   : > { %2836 = vmatmul.mubr.bf16.gmra.mrb[8].mxu0 %v3199_v50 }
 0x149   : > { %v817_v54 = vpop.permute.xlu1 %816 }
 0x14a   : > { %v838_v58 = vmul.f32 %v3712_v40, %v817_v54 }
 0x14c   : > { %v854_v2 = vadd.f32 %v838_v58, %v754_v61 }
 0x14e   : > { %v909_v0 = vpop.permute.xlu1 %908  ;;  %v954_v12 = vadd.f32 %v938_v63, %v854_v2 }
 0x14f   : > { %v936_v3 = vmul.f32 %v3714_v42, %v909_v0 }
 0x150   : > { %v976_v17 = vadd.f32 %v3733_v59, %v954_v12 }
 0x151   : > { %v952_v6 = vadd.f32 %v936_v3, %v852_v1 }
 0x152   : > { %v913_v10 = vpop.permute.xlu1 %912 }
 0x153   : > { %v974_v13 = vadd.f32 %v3733_v59, %v952_v6  ;;  %v937_v14 = vmul.f32 %v3714_v42, %v913_v10  ;;  %v3136_v42 = vld [vmem:[%s4044_s5 + $0x20] sm:$0xff]  }
 0x154   : > { %2851 = vmatprep.subr.bf16.mxu1 %v3136_v42 }
 0x155   : > { %v983_v15 = vpack.c.bf16 %v974_v13, %v973_v9  ;;  %v953_v16 = vadd.f32 %v937_v14, %v853_v11  ;;  %2852 = vmatpush3.bf16.msra.mxu1 %v3136_v42  ;;  %v3150_v42 = vld [vmem:[%s4048_s9 + $0x10] sm:$0xff]  }
 0x157   : > { %3200 = vtanh.bf16 %v983_v15  ;;  %v975_v43 = vadd.f32 %v3733_v59, %v953_v16  ;;  %v3137_v59 = vld [vmem:[%s4044_s5 + $0x28] sm:$0xff]   ;;  %v3143_v16 = vld [vmem:[%s4046_s7 + $0x18] sm:$0xff]  }
 0x158   : > { %2853 = vmatprep.subr.bf16.mxu1 %v3137_v59  ;;  %2881 = vmatprep.subr.bf16.mxu0 %v3143_v16 }
 0x159   : > { %v984_v18 = vpack.c.bf16 %v976_v17, %v975_v43  ;;  %2854 = vmatpush3.bf16.msra.mxu1 %v3137_v59  ;;  %2882 = vmatpush3.bf16.msra.mxu0 %v3143_v16  ;;  %v3144_v17 = vld [vmem:[%s4046_s7 + $0x20] sm:$0xff]   ;;  %v3145_v43 = vld [vmem:[%s4046_s7 + $0x28] sm:$0xff]  }
 0x15a   : > { %2855 = vmatprep.subr.bf16.mxu1 %v3138_v21  ;;  %2883 = vmatprep.subr.bf16.mxu0 %v3144_v17  ;;  %v3157_v16 = vld [vmem:[%s4050_s11 + $0x8] sm:$0xff]  }
 0x15b   : > { %3202 = vtanh.bf16 %v984_v18  ;;  %v3146_v18 = vld [vmem:[%s4046_s7 + $0x30] sm:$0xff]  }
 0x15d   : > { %2856 = vmatpush3.bf16.msra.mxu1 %v3138_v21  ;;  %2884 = vmatpush3.bf16.msra.mxu0 %v3144_v17  ;;  %v2618_v21 = vld [vmem:[%s4045_s6] ss:$0 sm:$0xff]  ;;  %v3158_v17 = vld [vmem:[%s4050_s11 + $0x10] sm:$0xff]  }
 0x15e   : > { %2857 = vmatprep.subr.bf16.mxu1 %v3139_v5  ;;  %2885 = vmatprep.subr.bf16.mxu0 %v3145_v43 }
 0x161   : > { %2858 = vmatpush3.bf16.msra.mxu1 %v3139_v5  ;;  %2886 = vmatpush3.bf16.msra.mxu0 %v3145_v43 }
 0x162   : > { %v3201_v40 = vpop.eup %3200  ;;  %2887 = vmatprep.subr.bf16.mxu0 %v3146_v18 }
 0x163   : > { %2839 = vmatprep.mubr.bf16.mxu0 %v3201_v40  ;;  %v3147_v40 = vld [vmem:[%s4046_s7 + $0x38] sm:$0xff]  }
 0x165   : > { %2888 = vmatpush3.bf16.msra.mxu0 %v3146_v18  ;;  %v2627_v18 = vld [vmem:[%s4047_s8] ss:$0 sm:$0xff] }
 0x166   : > { %v3203_v19 = vpop.eup %3202  ;;  %2889 = vmatprep.subr.bf16.mxu0 %v3147_v40 }
 0x167   : > { %2840 = vmatmul.mubr.bf16.gmra.mrb[12].mxu0 %v3203_v19  ;;  %v3148_v19 = vld [vmem:[%s4048_s9] sm:$0xff]  }
 0x168   : > { %2907 = vmatprep.subr.bf16.mxu1 %v3148_v19 }
 0x169   : > { %2890 = vmatpush3.bf16.msra.mxu0 %v3147_v40 }
 0x1e8   : > { %v2829_v25 = vpop.f32.mrb[0].mxu0 }
 0x1e9   : > { %v1098_v26 = vpop.f32.mrb[1].mxu0  ;;  %v1107_v28 = vadd.f32 %v2829_v25, %v2609_v39 }
 0x1ea   : > { %v2830_v27 = vpop.f32.mrb[2].mxu0  ;;  %v1099_v34 = vadd.f32 %v2609_v39, %v1098_v26 }
 0x1eb   : > { %v1110_v30 = vadd.f32 %v2830_v27, %v2609_v39  ;;  %v1101_v32 = vpop.f32.mrb[3].mxu0 }
 0x1ec   : > { %v1102_v7 = vadd.f32 %v2609_v39, %v1101_v32 }
 0x1ed   : > { %v1162_v35 = vpack.c.bf16 %v1110_v30, %v1107_v28 }
 0x1ee   : > { %v1161_v36 = vpack.c.bf16 %v1102_v7, %v1099_v34 }
 0x1f0   : > { %3204 = vtanh.bf16 %v1161_v36 }
 0x1f1   : > { %3206 = vtanh.bf16 %v1162_v35 }
 0x1f4   : > { %v2833_v37 = vpop.f32.mrb[4].mxu0 }
 0x1f5   : > { %v1114_v38 = vpop.f32.mrb[5].mxu0  ;;  %v1123_v44 = vadd.f32 %v2833_v37, %v2609_v39 }
 0x1f6   : > { %v2834_v41 = vpop.f32.mrb[6].mxu0  ;;  %v1115_v46 = vadd.f32 %v2609_v39, %v1114_v38 }
 0x1f7   : > { %v1126_v45 = vadd.f32 %v2834_v41, %v2609_v39  ;;  %v1117_v31 = vpop.f32.mrb[7].mxu0 }
 0x1f8   : > { %v1118_v47 = vadd.f32 %v2609_v39, %v1117_v31 }
 0x1f9   : > { %v1164_v48 = vpack.c.bf16 %v1126_v45, %v1123_v44 }
 0x1fa   : > { %v1163_v49 = vpack.c.bf16 %v1118_v47, %v1115_v46 }
 0x1fb   : > { %v3205_v50 = vpop.eup %3204 }
 0x1fc   : > { %v3207_v51 = vpop.eup %3206  ;;  %3208 = vtanh.bf16 %v1163_v49  ;;  %2859 = vmatprep.mubr.bf16.mxu1 %v3205_v50 }
 0x1fd   : > { %3210 = vtanh.bf16 %v1164_v48  ;;  %2860 = vmatmul.mubr.bf16.vlgmr.msra.gmra.mrb[0].mxu1 %v3207_v51 }
 0x1fe   : > { %2908 = vmatpush3.bf16.msra.mxu1 %v3148_v19 }
 0x1ff   : > { %2909 = vmatprep.subr.bf16.mxu1 %v3149_v20 }
 0x202   : > { %2910 = vmatpush3.bf16.msra.mxu1 %v3149_v20 }
 0x203   : > { %2911 = vmatprep.subr.bf16.mxu1 %v3150_v42 }
 0x206   : > { %2912 = vmatpush3.bf16.msra.mxu1 %v3150_v42 }
 0x207   : > { %v3209_v52 = vpop.eup %3208 }
 0x208   : > { %v3211_v53 = vpop.eup %3210  ;;  %2863 = vmatprep.mubr.bf16.mxu1 %v3209_v52 }
 0x209   : > { %2864 = vmatmul.mubr.bf16.gmra.mrb[4].mxu1 %v3211_v53 }
 0x219   : > { %v2837_v54 = vpop.f32.mrb[8].mxu0 }
 0x21a   : > { %v1130_v55 = vpop.f32.mrb[9].mxu0  ;;  %v1139_v33 = vadd.f32 %v2837_v54, %v2609_v39 }
 0x21b   : > { %v2838_v56 = vpop.f32.mrb[10].mxu0  ;;  %v1131_v60 = vadd.f32 %v2609_v39, %v1130_v55 }
 0x21c   : > { %v1142_v57 = vadd.f32 %v2838_v56, %v2609_v39  ;;  %v1133_v58 = vpop.f32.mrb[11].mxu0 }
 0x21d   : > { %v1134_v61 = vadd.f32 %v2609_v39, %v1133_v58 }
 0x21e   : > { %v1166_v62 = vpack.c.bf16 %v1142_v57, %v1139_v33 }
 0x21f   : > { %v1165_v63 = vpack.c.bf16 %v1134_v61, %v1131_v60 }
 0x221   : > { %3212 = vtanh.bf16 %v1165_v63 }
 0x222   : > { %3214 = vtanh.bf16 %v1166_v62 }
 0x22c   : > { %v3213_v0 = vpop.eup %3212 }
 0x22d   : > { %v3215_v1 = vpop.eup %3214  ;;  %2867 = vmatprep.mubr.bf16.mxu1 %v3213_v0 }
 0x22e   : > { %2868 = vmatmul.mubr.bf16.gmra.mrb[8].mxu1 %v3215_v1 }
 0x23a   : > { %v2841_v8 = vpop.f32.mrb[12].mxu0 }
 0x23b   : > { %v1146_v2 = vpop.f32.mrb[13].mxu0  ;;  %v1155_v4 = vadd.f32 %v2841_v8, %v2609_v39 }
 0x23c   : > { %v2842_v3 = vpop.f32.mrb[14].mxu0  ;;  %v1147_v10 = vadd.f32 %v2609_v39, %v1146_v2 }
 0x23d   : > { %v1158_v6 = vadd.f32 %v2842_v3, %v2609_v39  ;;  %v1149_v9 = vpop.f32.mrb[15].mxu0 }
 0x23e   : > { %v1150_v11 = vadd.f32 %v2609_v39, %v1149_v9 }
 0x23f   : > { %v1168_v12 = vpack.c.bf16 %v1158_v6, %v1155_v4 }
 0x240   : > { %v1167_v13 = vpack.c.bf16 %v1150_v11, %v1147_v10  ;;  %v3151_v10 = vld [vmem:[%s4048_s9 + $0x18] sm:$0xff]   ;;  %v3152_v11 = vld [vmem:[%s4048_s9 + $0x20] sm:$0xff]  }
 0x241   : > { %2913 = vmatprep.subr.bf16.mxu1 %v3151_v10 }
 0x242   : > { %3216 = vtanh.bf16 %v1167_v13  ;;  %2914 = vmatpush3.bf16.msra.mxu1 %v3151_v10  ;;  %v3154_v13 = vld [vmem:[%s4048_s9 + $0x30] sm:$0xff]   ;;  %v3165_v10 = vld [vmem:[#allocation2 + $0x8] sm:$0xff]  }
 0x243   : > { %3218 = vtanh.bf16 %v1168_v12  ;;  %2915 = vmatprep.subr.bf16.mxu1 %v3152_v11  ;;  %v3153_v12 = vld [vmem:[%s4048_s9 + $0x28] sm:$0xff]  }
 0x246   : > { %2916 = vmatpush3.bf16.msra.mxu1 %v3152_v11  ;;  %v3166_v11 = vld [vmem:[#allocation2 + $0x10] sm:$0xff]  }
 0x247   : > { %2917 = vmatprep.subr.bf16.mxu1 %v3153_v12 }
 0x24a   : > { %2918 = vmatpush3.bf16.msra.mxu1 %v3153_v12 }
 0x24b   : > { %2919 = vmatprep.subr.bf16.mxu1 %v3154_v13 }
 0x24d   : > { %v3217_v14 = vpop.eup %3216 }
 0x24e   : > { %v3219_v15 = vpop.eup %3218  ;;  %2871 = vmatprep.mubr.bf16.mxu1 %v3217_v14  ;;  %2920 = vmatpush3.bf16.msra.mxu1 %v3154_v13  ;;  %v3155_v14 = vld [vmem:[%s4048_s9 + $0x38] sm:$0xff]   ;;  %v2636_v13 = vld [vmem:[%s4049_s10] ss:$0 sm:$0xff] }
 0x24f   : > { %2872 = vmatmul.mubr.bf16.gmra.mrb[12].mxu1 %v3219_v15  ;;  %2921 = vmatprep.subr.bf16.mxu1 %v3155_v14  ;;  %v3156_v15 = vld [vmem:[%s4050_s11] sm:$0xff]  }
 0x250   : > { %2939 = vmatprep.subr.bf16.mxu0 %v3156_v15 }
 0x252   : > { %2922 = vmatpush3.bf16.msra.mxu1 %v3155_v14 }
 0x2d0   : > { %v2861_v59 = vpop.f32.mrb[0].mxu1 }
 0x2d1   : > { %v1282_v5 = vpop.f32.mrb[1].mxu1  ;;  %v1291_v23 = vadd.f32 %v2861_v59, %v2618_v21 }
 0x2d2   : > { %v2862_v22 = vpop.f32.mrb[2].mxu1  ;;  %v1283_v39 = vadd.f32 %v2618_v21, %v1282_v5 }
 0x2d3   : > { %v1294_v24 = vadd.f32 %v2862_v22, %v2618_v21  ;;  %v1285_v25 = vpop.f32.mrb[3].mxu1 }
 0x2d4   : > { %v1286_v26 = vadd.f32 %v2618_v21, %v1285_v25 }
 0x2d5   : > { %v1346_v27 = vpack.c.bf16 %v1294_v24, %v1291_v23 }
 0x2d6   : > { %v1345_v28 = vpack.c.bf16 %v1286_v26, %v1283_v39 }
 0x2d8   : > { %3220 = vtanh.bf16 %v1345_v28 }
 0x2d9   : > { %3222 = vtanh.bf16 %v1346_v27 }
 0x2dc   : > { %v2865_v30 = vpop.f32.mrb[4].mxu1 }
 0x2dd   : > { %v1298_v32 = vpop.f32.mrb[5].mxu1  ;;  %v1307_v7 = vadd.f32 %v2865_v30, %v2618_v21 }
 0x2de   : > { %v2866_v34 = vpop.f32.mrb[6].mxu1  ;;  %v1299_v37 = vadd.f32 %v2618_v21, %v1298_v32 }
 0x2df   : > { %v1310_v35 = vadd.f32 %v2866_v34, %v2618_v21  ;;  %v1301_v36 = vpop.f32.mrb[7].mxu1 }
 0x2e0   : > { %v1302_v38 = vadd.f32 %v2618_v21, %v1301_v36 }
 0x2e1   : > { %v1348_v41 = vpack.c.bf16 %v1310_v35, %v1307_v7 }
 0x2e2   : > { %v1347_v44 = vpack.c.bf16 %v1302_v38, %v1299_v37 }
 0x2e3   : > { %v3221_v45 = vpop.eup %3220 }
 0x2e4   : > { %v3223_v31 = vpop.eup %3222  ;;  %3224 = vtanh.bf16 %v1347_v44  ;;  %2891 = vmatprep.mubr.bf16.mxu0 %v3221_v45 }
 0x2e5   : > { %3226 = vtanh.bf16 %v1348_v41  ;;  %2892 = vmatmul.mubr.bf16.vlgmr.msra.gmra.mrb[16].mxu0 %v3223_v31 }
 0x2e6   : > { %2940 = vmatpush3.bf16.msra.mxu0 %v3156_v15 }
 0x2e7   : > { %2941 = vmatprep.subr.bf16.mxu0 %v3157_v16 }
 0x2ea   : > { %2942 = vmatpush3.bf16.msra.mxu0 %v3157_v16 }
 0x2eb   : > { %2943 = vmatprep.subr.bf16.mxu0 %v3158_v17 }
 0x2ee   : > { %2944 = vmatpush3.bf16.msra.mxu0 %v3158_v17 }
 0x2ef   : > { %v3225_v46 = vpop.eup %3224 }
 0x2f0   : > { %v3227_v47 = vpop.eup %3226  ;;  %2895 = vmatprep.mubr.bf16.mxu0 %v3225_v46 }
 0x2f1   : > { %2896 = vmatmul.mubr.bf16.gmra.mrb[20].mxu0 %v3227_v47 }
 0x301   : > { %v2869_v48 = vpop.f32.mrb[8].mxu1 }
 0x302   : > { %v1314_v49 = vpop.f32.mrb[9].mxu1  ;;  %v1323_v51 = vadd.f32 %v2869_v48, %v2618_v21 }
 0x303   : > { %v2870_v50 = vpop.f32.mrb[10].mxu1  ;;  %v1315_v54 = vadd.f32 %v2618_v21, %v1314_v49 }
 0x304   : > { %v1326_v52 = vadd.f32 %v2870_v50, %v2618_v21  ;;  %v1317_v53 = vpop.f32.mrb[11].mxu1 }
 0x305   : > { %v1318_v55 = vadd.f32 %v2618_v21, %v1317_v53 }
 0x306   : > { %v1350_v56 = vpack.c.bf16 %v1326_v52, %v1323_v51 }
 0x307   : > { %v1349_v33 = vpack.c.bf16 %v1318_v55, %v1315_v54 }
 0x309   : > { %3228 = vtanh.bf16 %v1349_v33 }
 0x30a   : > { %3230 = vtanh.bf16 %v1350_v56 }
 0x314   : > { %v3229_v57 = vpop.eup %3228 }
 0x315   : > { %v3231_v58 = vpop.eup %3230  ;;  %2899 = vmatprep.mubr.bf16.mxu0 %v3229_v57 }
 0x316   : > { %2900 = vmatmul.mubr.bf16.gmra.mrb[24].mxu0 %v3231_v58 }
 0x322   : > { %v2873_v60 = vpop.f32.mrb[12].mxu1 }
 0x323   : > { %v1330_v61 = vpop.f32.mrb[13].mxu1  ;;  %v1339_v63 = vadd.f32 %v2873_v60, %v2618_v21 }
 0x324   : > { %v2874_v62 = vpop.f32.mrb[14].mxu1  ;;  %v1331_v8 = vadd.f32 %v2618_v21, %v1330_v61 }
 0x325   : > { %v1342_v0 = vadd.f32 %v2874_v62, %v2618_v21  ;;  %v1333_v1 = vpop.f32.mrb[15].mxu1 }
 0x326   : > { %v1334_v2 = vadd.f32 %v2618_v21, %v1333_v1 }
 0x327   : > { %v1352_v3 = vpack.c.bf16 %v1342_v0, %v1339_v63 }
 0x328   : > { %v1351_v4 = vpack.c.bf16 %v1334_v2, %v1331_v8  ;;  %v3159_v8 = vld [vmem:[%s4050_s11 + $0x18] sm:$0xff]   ;;  %v3160_v2 = vld [vmem:[%s4050_s11 + $0x20] sm:$0xff]  }
 0x329   : > { %2945 = vmatprep.subr.bf16.mxu0 %v3159_v8 }
 0x32a   : > { %3232 = vtanh.bf16 %v1351_v4  ;;  %2946 = vmatpush3.bf16.msra.mxu0 %v3159_v8  ;;  %v3162_v4 = vld [vmem:[%s4050_s11 + $0x30] sm:$0xff]   ;;  %v3173_v8 = vld [vmem:[#allocation4 + $0x8] sm:$0xff]  }
 0x32b   : > { %3234 = vtanh.bf16 %v1352_v3  ;;  %2947 = vmatprep.subr.bf16.mxu0 %v3160_v2  ;;  %v3161_v3 = vld [vmem:[%s4050_s11 + $0x28] sm:$0xff]  }
 0x32e   : > { %2948 = vmatpush3.bf16.msra.mxu0 %v3160_v2  ;;  %v3174_v2 = vld [vmem:[#allocation4 + $0x10] sm:$0xff]  }
 0x32f   : > { %2949 = vmatprep.subr.bf16.mxu0 %v3161_v3 }
 0x332   : > { %2950 = vmatpush3.bf16.msra.mxu0 %v3161_v3 }
 0x333   : > { %2951 = vmatprep.subr.bf16.mxu0 %v3162_v4 }
 0x335   : > { %v3233_v6 = vpop.eup %3232 }
 0x336   : > { %v3235_v9 = vpop.eup %3234  ;;  %2903 = vmatprep.mubr.bf16.mxu0 %v3233_v6  ;;  %2952 = vmatpush3.bf16.msra.mxu0 %v3162_v4  ;;  %v3163_v6 = vld [vmem:[%s4050_s11 + $0x38] sm:$0xff]   ;;  %v2645_v4 = vld [vmem:[%s4051_s12] ss:$0 sm:$0xff] }
 0x337   : > { %2904 = vmatmul.mubr.bf16.gmra.mrb[28].mxu0 %v3235_v9  ;;  %2953 = vmatprep.subr.bf16.mxu0 %v3163_v6  ;;  %v3164_v9 = vld [vmem:[#allocation2] sm:$0xff]  }
 0x338   : > { %2971 = vmatprep.subr.bf16.mxu1 %v3164_v9 }
 0x33a   : > { %2954 = vmatpush3.bf16.msra.mxu0 %v3163_v6 }
 0x3b8   : > { %v2893_v43 = vpop.f32.mrb[16].mxu0 }
 0x3b9   : > { %v1466_v40 = vpop.f32.mrb[17].mxu0  ;;  %v1475_v20 = vadd.f32 %v2893_v43, %v2627_v18 }
 0x3ba   : > { %v2894_v19 = vpop.f32.mrb[18].mxu0  ;;  %v1467_v21 = vadd.f32 %v2627_v18, %v1466_v40 }
 0x3bb   : > { %v1478_v42 = vadd.f32 %v2894_v19, %v2627_v18  ;;  %v1469_v59 = vpop.f32.mrb[19].mxu0 }
 0x3bc   : > { %v1470_v5 = vadd.f32 %v2627_v18, %v1469_v59 }
 0x3bd   : > { %v1530_v22 = vpack.c.bf16 %v1478_v42, %v1475_v20 }
 0x3be   : > { %v1529_v23 = vpack.c.bf16 %v1470_v5, %v1467_v21 }
 0x3c0   : > { %3236 = vtanh.bf16 %v1529_v23 }
 0x3c1   : > { %3238 = vtanh.bf16 %v1530_v22 }
 0x3c4   : > { %v2897_v24 = vpop.f32.mrb[20].mxu0 }
 0x3c5   : > { %v1482_v25 = vpop.f32.mrb[21].mxu0  ;;  %v1491_v26 = vadd.f32 %v2897_v24, %v2627_v18 }
 0x3c6   : > { %v2898_v39 = vpop.f32.mrb[22].mxu0  ;;  %v1483_v30 = vadd.f32 %v2627_v18, %v1482_v25 }
 0x3c7   : > { %v1494_v27 = vadd.f32 %v2898_v39, %v2627_v18  ;;  %v1485_v28 = vpop.f32.mrb[23].mxu0 }
 0x3c8   : > { %v1486_v32 = vadd.f32 %v2627_v18, %v1485_v28 }
 0x3c9   : > { %v1532_v34 = vpack.c.bf16 %v1494_v27, %v1491_v26 }
 0x3ca   : > { %v1531_v7 = vpack.c.bf16 %v1486_v32, %v1483_v30 }
 0x3cb   : > { %v3237_v35 = vpop.eup %3236 }
 0x3cc   : > { %v3239_v36 = vpop.eup %3238  ;;  %3240 = vtanh.bf16 %v1531_v7  ;;  %2923 = vmatprep.mubr.bf16.mxu1 %v3237_v35 }
 0x3cd   : > { %3242 = vtanh.bf16 %v1532_v34  ;;  %2924 = vmatmul.mubr.bf16.vlgmr.msra.gmra.mrb[16].mxu1 %v3239_v36 }
 0x3ce   : > { %2972 = vmatpush3.bf16.msra.mxu1 %v3164_v9 }
 0x3cf   : > { %2973 = vmatprep.subr.bf16.mxu1 %v3165_v10 }
 0x3d2   : > { %2974 = vmatpush3.bf16.msra.mxu1 %v3165_v10 }
 0x3d3   : > { %2975 = vmatprep.subr.bf16.mxu1 %v3166_v11 }
 0x3d6   : > { %2976 = vmatpush3.bf16.msra.mxu1 %v3166_v11 }
 0x3d7   : > { %v3241_v37 = vpop.eup %3240 }
 0x3d8   : > { %v3243_v38 = vpop.eup %3242  ;;  %2927 = vmatprep.mubr.bf16.mxu1 %v3241_v37 }
 0x3d9   : > { %2928 = vmatmul.mubr.bf16.gmra.mrb[20].mxu1 %v3243_v38 }
 0x3e9   : > { %v2901_v41 = vpop.f32.mrb[24].mxu0 }
 0x3ea   : > { %v1498_v44 = vpop.f32.mrb[25].mxu0  ;;  %v1507_v31 = vadd.f32 %v2901_v41, %v2627_v18 }
 0x3eb   : > { %v2902_v45 = vpop.f32.mrb[26].mxu0  ;;  %v1499_v48 = vadd.f32 %v2627_v18, %v1498_v44 }
 0x3ec   : > { %v1510_v46 = vadd.f32 %v2902_v45, %v2627_v18  ;;  %v1501_v47 = vpop.f32.mrb[27].mxu0 }
 0x3ed   : > { %v1502_v49 = vadd.f32 %v2627_v18, %v1501_v47 }
 0x3ee   : > { %v1534_v50 = vpack.c.bf16 %v1510_v46, %v1507_v31 }
 0x3ef   : > { %v1533_v51 = vpack.c.bf16 %v1502_v49, %v1499_v48 }
 0x3f1   : > { %3244 = vtanh.bf16 %v1533_v51 }
 0x3f2   : > { %3246 = vtanh.bf16 %v1534_v50 }
 0x3fc   : > { %v3245_v52 = vpop.eup %3244 }
 0x3fd   : > { %v3247_v53 = vpop.eup %3246  ;;  %2931 = vmatprep.mubr.bf16.mxu1 %v3245_v52 }
 0x3fe   : > { %2932 = vmatmul.mubr.bf16.gmra.mrb[24].mxu1 %v3247_v53 }
 0x40a   : > { %v2905_v54 = vpop.f32.mrb[28].mxu0 }
 0x40b   : > { %v1514_v55 = vpop.f32.mrb[29].mxu0  ;;  %v1523_v33 = vadd.f32 %v2905_v54, %v2627_v18 }
 0x40c   : > { %v2906_v56 = vpop.f32.mrb[30].mxu0  ;;  %v1515_v60 = vadd.f32 %v2627_v18, %v1514_v55 }
 0x40d   : > { %v1526_v57 = vadd.f32 %v2906_v56, %v2627_v18  ;;  %v1517_v58 = vpop.f32.mrb[31].mxu0 }
 0x40e   : > { %v1518_v61 = vadd.f32 %v2627_v18, %v1517_v58 }
 0x40f   : > { %v1536_v62 = vpack.c.bf16 %v1526_v57, %v1523_v33 }
 0x410   : > { %v1535_v63 = vpack.c.bf16 %v1518_v61, %v1515_v60  ;;  %v3167_v60 = vld [vmem:[#allocation2 + $0x18] sm:$0xff]   ;;  %v3168_v61 = vld [vmem:[#allocation2 + $0x20] sm:$0xff]  }
 0x411   : > { %2977 = vmatprep.subr.bf16.mxu1 %v3167_v60 }
 0x412   : > { %3248 = vtanh.bf16 %v1535_v63  ;;  %2978 = vmatpush3.bf16.msra.mxu1 %v3167_v60  ;;  %v3170_v63 = vld [vmem:[#allocation2 + $0x30] sm:$0xff]   ;;  %v3181_v60 = vld [vmem:[%s4056_s17 + $0x8] sm:$0xff]  }
 0x413   : > { %3250 = vtanh.bf16 %v1536_v62  ;;  %2979 = vmatprep.subr.bf16.mxu1 %v3168_v61  ;;  %v3169_v62 = vld [vmem:[#allocation2 + $0x28] sm:$0xff]  }
 0x416   : > { %2980 = vmatpush3.bf16.msra.mxu1 %v3168_v61  ;;  %v3182_v61 = vld [vmem:[%s4056_s17 + $0x10] sm:$0xff]  }
 0x417   : > { %2981 = vmatprep.subr.bf16.mxu1 %v3169_v62 }
 0x41a   : > { %2982 = vmatpush3.bf16.msra.mxu1 %v3169_v62 }
 0x41b   : > { %2983 = vmatprep.subr.bf16.mxu1 %v3170_v63 }
 0x41d   : > { %v3249_v0 = vpop.eup %3248 }
 0x41e   : > { %v3251_v1 = vpop.eup %3250  ;;  %2935 = vmatprep.mubr.bf16.mxu1 %v3249_v0  ;;  %2984 = vmatpush3.bf16.msra.mxu1 %v3170_v63  ;;  %v3171_v0 = vld [vmem:[#allocation2 + $0x38] sm:$0xff]   ;;  %v2654_v63 = vld [vmem:[%s4053_s14] ss:$0 sm:$0xff] }
 0x41f   : > { %2936 = vmatmul.mubr.bf16.gmra.mrb[28].mxu1 %v3251_v1  ;;  %2985 = vmatprep.subr.bf16.mxu1 %v3171_v0  ;;  %v3172_v1 = vld [vmem:[#allocation4] sm:$0xff]  }
 0x420   : > { %3003 = vmatprep.subr.bf16.mxu0 %v3172_v1 }
 0x422   : > { %2986 = vmatpush3.bf16.msra.mxu1 %v3171_v0 }
 0x4a0   : > { %v2925_v12 = vpop.f32.mrb[16].mxu1 }
 0x4a1   : > { %v1650_v14 = vpop.f32.mrb[17].mxu1  ;;  %v1659_v16 = vadd.f32 %v2925_v12, %v2636_v13 }
 0x4a2   : > { %v2926_v15 = vpop.f32.mrb[18].mxu1  ;;  %v1651_v18 = vadd.f32 %v2636_v13, %v1650_v14 }
 0x4a3   : > { %v1662_v17 = vadd.f32 %v2926_v15, %v2636_v13  ;;  %v1653_v43 = vpop.f32.mrb[19].mxu1 }
 0x4a4   : > { %v1654_v40 = vadd.f32 %v2636_v13, %v1653_v43 }
 0x4a5   : > { %v1714_v19 = vpack.c.bf16 %v1662_v17, %v1659_v16 }
 0x4a6   : > { %v1713_v20 = vpack.c.bf16 %v1654_v40, %v1651_v18 }
 0x4a8   : > { %3252 = vtanh.bf16 %v1713_v20 }
 0x4a9   : > { %3254 = vtanh.bf16 %v1714_v19 }
 0x4ac   : > { %v2929_v42 = vpop.f32.mrb[20].mxu1 }
 0x4ad   : > { %v1666_v59 = vpop.f32.mrb[21].mxu1  ;;  %v1675_v5 = vadd.f32 %v2929_v42, %v2636_v13 }
 0x4ae   : > { %v2930_v21 = vpop.f32.mrb[22].mxu1  ;;  %v1667_v24 = vadd.f32 %v2636_v13, %v1666_v59 }
 0x4af   : > { %v1678_v22 = vadd.f32 %v2930_v21, %v2636_v13  ;;  %v1669_v23 = vpop.f32.mrb[23].mxu1 }
 0x4b0   : > { %v1670_v25 = vadd.f32 %v2636_v13, %v1669_v23 }
 0x4b1   : > { %v1716_v39 = vpack.c.bf16 %v1678_v22, %v1675_v5 }
 0x4b2   : > { %v1715_v26 = vpack.c.bf16 %v1670_v25, %v1667_v24 }
 0x4b3   : > { %v3253_v27 = vpop.eup %3252 }
 0x4b4   : > { %v3255_v28 = vpop.eup %3254  ;;  %3256 = vtanh.bf16 %v1715_v26  ;;  %2955 = vmatprep.mubr.bf16.mxu0 %v3253_v27 }
 0x4b5   : > { %3258 = vtanh.bf16 %v1716_v39  ;;  %2956 = vmatmul.mubr.bf16.vlgmr.msra.gmra.mrb[32].mxu0 %v3255_v28 }
 0x4b6   : > { %3004 = vmatpush3.bf16.msra.mxu0 %v3172_v1 }
 0x4b7   : > { %3005 = vmatprep.subr.bf16.mxu0 %v3173_v8 }
 0x4ba   : > { %3006 = vmatpush3.bf16.msra.mxu0 %v3173_v8 }
 0x4bb   : > { %3007 = vmatprep.subr.bf16.mxu0 %v3174_v2 }
 0x4be   : > { %3008 = vmatpush3.bf16.msra.mxu0 %v3174_v2 }
 0x4bf   : > { %v3257_v30 = vpop.eup %3256 }
 0x4c0   : > { %v3259_v32 = vpop.eup %3258  ;;  %2959 = vmatprep.mubr.bf16.mxu0 %v3257_v30 }
 0x4c1   : > { %2960 = vmatmul.mubr.bf16.gmra.mrb[36].mxu0 %v3259_v32 }
 0x4d1   : > { %v2933_v34 = vpop.f32.mrb[24].mxu1 }
 0x4d2   : > { %v1682_v7 = vpop.f32.mrb[25].mxu1  ;;  %v1691_v36 = vadd.f32 %v2933_v34, %v2636_v13 }
 0x4d3   : > { %v2934_v35 = vpop.f32.mrb[26].mxu1  ;;  %v1683_v41 = vadd.f32 %v2636_v13, %v1682_v7 }
 0x4d4   : > { %v1694_v37 = vadd.f32 %v2934_v35, %v2636_v13  ;;  %v1685_v38 = vpop.f32.mrb[27].mxu1 }
 0x4d5   : > { %v1686_v44 = vadd.f32 %v2636_v13, %v1685_v38 }
 0x4d6   : > { %v1718_v45 = vpack.c.bf16 %v1694_v37, %v1691_v36 }
 0x4d7   : > { %v1717_v31 = vpack.c.bf16 %v1686_v44, %v1683_v41 }
 0x4d9   : > { %3260 = vtanh.bf16 %v1717_v31 }
 0x4da   : > { %3262 = vtanh.bf16 %v1718_v45 }
 0x4e4   : > { %v3261_v46 = vpop.eup %3260 }
 0x4e5   : > { %v3263_v47 = vpop.eup %3262  ;;  %2963 = vmatprep.mubr.bf16.mxu0 %v3261_v46 }
 0x4e6   : > { %2964 = vmatmul.mubr.bf16.gmra.mrb[40].mxu0 %v3263_v47 }
 0x4f2   : > { %v2937_v48 = vpop.f32.mrb[28].mxu1 }
 0x4f3   : > { %v1698_v49 = vpop.f32.mrb[29].mxu1  ;;  %v1707_v51 = vadd.f32 %v2937_v48, %v2636_v13 }
 0x4f4   : > { %v2938_v50 = vpop.f32.mrb[30].mxu1  ;;  %v1699_v54 = vadd.f32 %v2636_v13, %v1698_v49 }
 0x4f5   : > { %v1710_v52 = vadd.f32 %v2938_v50, %v2636_v13  ;;  %v1701_v53 = vpop.f32.mrb[31].mxu1 }
 0x4f6   : > { %v1702_v55 = vadd.f32 %v2636_v13, %v1701_v53 }
 0x4f7   : > { %v1720_v56 = vpack.c.bf16 %v1710_v52, %v1707_v51 }
 0x4f8   : > { %v1719_v33 = vpack.c.bf16 %v1702_v55, %v1699_v54  ;;  %v3175_v54 = vld [vmem:[#allocation4 + $0x18] sm:$0xff]   ;;  %v3176_v55 = vld [vmem:[#allocation4 + $0x20] sm:$0xff]  }
 0x4f9   : > { %3009 = vmatprep.subr.bf16.mxu0 %v3175_v54 }
 0x4fa   : > { %3264 = vtanh.bf16 %v1719_v33  ;;  %3010 = vmatpush3.bf16.msra.mxu0 %v3175_v54  ;;  %v3178_v33 = vld [vmem:[#allocation4 + $0x30] sm:$0xff]   ;;  %v2663_v54 = vld [vmem:[%s4055_s16] ss:$0 sm:$0xff] }
 0x4fb   : > { %3266 = vtanh.bf16 %v1720_v56  ;;  %3011 = vmatprep.subr.bf16.mxu0 %v3176_v55  ;;  %v3177_v56 = vld [vmem:[#allocation4 + $0x28] sm:$0xff]  }
 0x4fe   : > { %3012 = vmatpush3.bf16.msra.mxu0 %v3176_v55 }
 0x4ff   : > { %3013 = vmatprep.subr.bf16.mxu0 %v3177_v56 }
 0x502   : > { %3014 = vmatpush3.bf16.msra.mxu0 %v3177_v56 }
 0x503   : > { %3015 = vmatprep.subr.bf16.mxu0 %v3178_v33 }
 0x505   : > { %v3265_v57 = vpop.eup %3264 }
 0x506   : > { %v3267_v58 = vpop.eup %3266  ;;  %2967 = vmatprep.mubr.bf16.mxu0 %v3265_v57  ;;  %3016 = vmatpush3.bf16.msra.mxu0 %v3178_v33  ;;  %v3179_v57 = vld [vmem:[#allocation4 + $0x38] sm:$0xff]  }
 0x507   : > { %2968 = vmatmul.mubr.bf16.gmra.mrb[44].mxu0 %v3267_v58  ;;  %3017 = vmatprep.subr.bf16.mxu0 %v3179_v57  ;;  %v3180_v58 = vld [vmem:[%s4056_s17] sm:$0xff]  }
 0x508   : > { %3035 = vmatprep.subr.bf16.mxu1 %v3180_v58 }
 0x50a   : > { %3018 = vmatpush3.bf16.msra.mxu0 %v3179_v57 }
 0x588   : > { %v2957_v3 = vpop.f32.mrb[32].mxu0 }
 0x589   : > { %v1834_v6 = vpop.f32.mrb[33].mxu0  ;;  %v1843_v10 = vadd.f32 %v2957_v3, %v2645_v4 }
 0x58a   : > { %v2958_v9 = vpop.f32.mrb[34].mxu0  ;;  %v1835_v13 = vadd.f32 %v2645_v4, %v1834_v6 }
 0x58b   : > { %v1846_v11 = vadd.f32 %v2958_v9, %v2645_v4  ;;  %v1837_v12 = vpop.f32.mrb[35].mxu0 }
 0x58c   : > { %v1838_v14 = vadd.f32 %v2645_v4, %v1837_v12 }
 0x58d   : > { %v1898_v15 = vpack.c.bf16 %v1846_v11, %v1843_v10 }
 0x58e   : > { %v1897_v16 = vpack.c.bf16 %v1838_v14, %v1835_v13 }
 0x590   : > { %3268 = vtanh.bf16 %v1897_v16 }
 0x591   : > { %3270 = vtanh.bf16 %v1898_v15 }
 0x594   : > { %v2961_v17 = vpop.f32.mrb[36].mxu0 }
 0x595   : > { %v1850_v43 = vpop.f32.mrb[37].mxu0  ;;  %v1859_v40 = vadd.f32 %v2961_v17, %v2645_v4 }
 0x596   : > { %v2962_v18 = vpop.f32.mrb[38].mxu0  ;;  %v1851_v42 = vadd.f32 %v2645_v4, %v1850_v43 }
 0x597   : > { %v1862_v19 = vadd.f32 %v2962_v18, %v2645_v4  ;;  %v1853_v20 = vpop.f32.mrb[39].mxu0 }
 0x598   : > { %v1854_v59 = vadd.f32 %v2645_v4, %v1853_v20 }
 0x599   : > { %v1900_v21 = vpack.c.bf16 %v1862_v19, %v1859_v40 }
 0x59a   : > { %v1899_v5 = vpack.c.bf16 %v1854_v59, %v1851_v42 }
 0x59b   : > { %v3269_v22 = vpop.eup %3268 }
 0x59c   : > { %v3271_v23 = vpop.eup %3270  ;;  %3272 = vtanh.bf16 %v1899_v5  ;;  %2987 = vmatprep.mubr.bf16.mxu1 %v3269_v22 }
 0x59d   : > { %3274 = vtanh.bf16 %v1900_v21  ;;  %2988 = vmatmul.mubr.bf16.vlgmr.msra.gmra.mrb[32].mxu1 %v3271_v23 }
 0x59e   : > { %3036 = vmatpush3.bf16.msra.mxu1 %v3180_v58 }
 0x59f   : > { %3037 = vmatprep.subr.bf16.mxu1 %v3181_v60 }
 0x5a2   : > { %3038 = vmatpush3.bf16.msra.mxu1 %v3181_v60 }
 0x5a3   : > { %3039 = vmatprep.subr.bf16.mxu1 %v3182_v61 }
 0x5a6   : > { %3040 = vmatpush3.bf16.msra.mxu1 %v3182_v61 }
 0x5a7   : > { %v3273_v24 = vpop.eup %3272 }
 0x5a8   : > { %v3275_v25 = vpop.eup %3274  ;;  %2991 = vmatprep.mubr.bf16.mxu1 %v3273_v24 }
 0x5a9   : > { %2992 = vmatmul.mubr.bf16.gmra.mrb[36].mxu1 %v3275_v25 }
 0x5b9   : > { %v2965_v39 = vpop.f32.mrb[40].mxu0 }
 0x5ba   : > { %v1866_v26 = vpop.f32.mrb[41].mxu0  ;;  %v1875_v28 = vadd.f32 %v2965_v39, %v2645_v4 }
 0x5bb   : > { %v2966_v27 = vpop.f32.mrb[42].mxu0  ;;  %v1867_v34 = vadd.f32 %v2645_v4, %v1866_v26 }
 0x5bc   : > { %v1878_v30 = vadd.f32 %v2966_v27, %v2645_v4  ;;  %v1869_v32 = vpop.f32.mrb[43].mxu0 }
 0x5bd   : > { %v1870_v7 = vadd.f32 %v2645_v4, %v1869_v32 }
 0x5be   : > { %v1902_v35 = vpack.c.bf16 %v1878_v30, %v1875_v28 }
 0x5bf   : > { %v1901_v36 = vpack.c.bf16 %v1870_v7, %v1867_v34 }
 0x5c1   : > { %3276 = vtanh.bf16 %v1901_v36 }
 0x5c2   : > { %3278 = vtanh.bf16 %v1902_v35 }
 0x5cc   : > { %v3277_v37 = vpop.eup %3276 }
 0x5cd   : > { %v3279_v38 = vpop.eup %3278  ;;  %2995 = vmatprep.mubr.bf16.mxu1 %v3277_v37 }
 0x5ce   : > { %2996 = vmatmul.mubr.bf16.gmra.mrb[40].mxu1 %v3279_v38 }
 0x5da   : > { %v2969_v41 = vpop.f32.mrb[44].mxu0 }
 0x5db   : > { %v1882_v44 = vpop.f32.mrb[45].mxu0  ;;  %v1891_v31 = vadd.f32 %v2969_v41, %v2645_v4 }
 0x5dc   : > { %v2970_v45 = vpop.f32.mrb[46].mxu0  ;;  %v1883_v48 = vadd.f32 %v2645_v4, %v1882_v44 }
 0x5dd   : > { %v1894_v46 = vadd.f32 %v2970_v45, %v2645_v4  ;;  %v1885_v47 = vpop.f32.mrb[47].mxu0 }
 0x5de   : > { %v1886_v49 = vadd.f32 %v2645_v4, %v1885_v47 }
 0x5df   : > { %v1904_v50 = vpack.c.bf16 %v1894_v46, %v1891_v31 }
 0x5e0   : > { %v1903_v51 = vpack.c.bf16 %v1886_v49, %v1883_v48  ;;  %v3183_v48 = vld [vmem:[%s4056_s17 + $0x18] sm:$0xff]   ;;  %v3184_v49 = vld [vmem:[%s4056_s17 + $0x20] sm:$0xff]  }
 0x5e1   : > { %3041 = vmatprep.subr.bf16.mxu1 %v3183_v48 }
 0x5e2   : > { %3280 = vtanh.bf16 %v1903_v51  ;;  %3042 = vmatpush3.bf16.msra.mxu1 %v3183_v48  ;;  %v3186_v51 = vld [vmem:[%s4056_s17 + $0x30] sm:$0xff]  }
 0x5e3   : > { %3282 = vtanh.bf16 %v1904_v50  ;;  %3043 = vmatprep.subr.bf16.mxu1 %v3184_v49  ;;  %v3185_v50 = vld [vmem:[%s4056_s17 + $0x28] sm:$0xff]  }
 0x5e6   : > { %3044 = vmatpush3.bf16.msra.mxu1 %v3184_v49 }
 0x5e7   : > { %3045 = vmatprep.subr.bf16.mxu1 %v3185_v50 }
 0x5ea   : > { %3046 = vmatpush3.bf16.msra.mxu1 %v3185_v50 }
 0x5eb   : > { %3047 = vmatprep.subr.bf16.mxu1 %v3186_v51 }
 0x5ed   : > { %v3281_v52 = vpop.eup %3280 }
 0x5ee   : > { %v3283_v53 = vpop.eup %3282  ;;  %2999 = vmatprep.mubr.bf16.mxu1 %v3281_v52  ;;  %3048 = vmatpush3.bf16.msra.mxu1 %v3186_v51  ;;  %v3187_v52 = vld [vmem:[%s4056_s17 + $0x38] sm:$0xff]  }
 0x5ef   : > { %3000 = vmatmul.mubr.bf16.gmra.mrb[44].mxu1 %v3283_v53  ;;  %3049 = vmatprep.subr.bf16.mxu1 %v3187_v52 }
 0x5f2   : > { %3050 = vmatpush3.bf16.msra.mxu1 %v3187_v52  ;;  %v3950_v52 = vand.u32 127, %v735_v29 }
 0x5f4   : > { %vm2451_vm0 = vcmp.eq.s32.totalorder %v3950_v52, 1 }
 0x670   : > { %v2989_v62 = vpop.f32.mrb[32].mxu1 }
 0x671   : > { %v2018_v0 = vpop.f32.mrb[33].mxu1  ;;  %v2027_v8 = vadd.f32 %v2989_v62, %v2654_v63 }
 0x672   : > { %v2990_v1 = vpop.f32.mrb[34].mxu1  ;;  %v2019_v4 = vadd.f32 %v2654_v63, %v2018_v0 }
 0x673   : > { %v2030_v2 = vadd.f32 %v2990_v1, %v2654_v63  ;;  %v2021_v3 = vpop.f32.mrb[35].mxu1 }
 0x674   : > { %v2022_v6 = vadd.f32 %v2654_v63, %v2021_v3 }
 0x675   : > { %v2082_v9 = vpack.c.bf16 %v2030_v2, %v2027_v8 }
 0x676   : > { %v2081_v10 = vpack.c.bf16 %v2022_v6, %v2019_v4 }
 0x678   : > { %3284 = vtanh.bf16 %v2081_v10 }
 0x679   : > { %3286 = vtanh.bf16 %v2082_v9 }
 0x67c   : > { %v2993_v11 = vpop.f32.mrb[36].mxu1 }
 0x67d   : > { %v2034_v12 = vpop.f32.mrb[37].mxu1  ;;  %v2043_v14 = vadd.f32 %v2993_v11, %v2654_v63 }
 0x67e   : > { %v2994_v13 = vpop.f32.mrb[38].mxu1  ;;  %v2035_v17 = vadd.f32 %v2654_v63, %v2034_v12 }
 0x67f   : > { %v2046_v15 = vadd.f32 %v2994_v13, %v2654_v63  ;;  %v2037_v16 = vpop.f32.mrb[39].mxu1 }
 0x680   : > { %v2038_v43 = vadd.f32 %v2654_v63, %v2037_v16 }
 0x681   : > { %v2084_v18 = vpack.c.bf16 %v2046_v15, %v2043_v14 }
 0x682   : > { %v2083_v40 = vpack.c.bf16 %v2038_v43, %v2035_v17 }
 0x683   : > { %v3285_v19 = vpop.eup %3284 }
 0x684   : > { %v3287_v20 = vpop.eup %3286  ;;  %3288 = vtanh.bf16 %v2083_v40  ;;  %3019 = vmatprep.mubr.bf16.mxu0 %v3285_v19 }
 0x685   : > { %3290 = vtanh.bf16 %v2084_v18  ;;  %3020 = vmatmul.mubr.bf16.vlgmr.msra.gmra.mrb[48].mxu0 %v3287_v20 }
 0x68f   : > { %v3289_v42 = vpop.eup %3288 }
 0x690   : > { %v3291_v59 = vpop.eup %3290  ;;  %3023 = vmatprep.mubr.bf16.mxu0 %v3289_v42 }
 0x691   : > { %3024 = vmatmul.mubr.bf16.gmra.mrb[52].mxu0 %v3291_v59 }
 0x6a1   : > { %v2997_v21 = vpop.f32.mrb[40].mxu1 }
 0x6a2   : > { %v2050_v5 = vpop.f32.mrb[41].mxu1  ;;  %v2059_v23 = vadd.f32 %v2997_v21, %v2654_v63 }
 0x6a3   : > { %v2998_v22 = vpop.f32.mrb[42].mxu1  ;;  %v2051_v39 = vadd.f32 %v2654_v63, %v2050_v5 }
 0x6a4   : > { %v2062_v24 = vadd.f32 %v2998_v22, %v2654_v63  ;;  %v2053_v25 = vpop.f32.mrb[43].mxu1 }
 0x6a5   : > { %v2054_v26 = vadd.f32 %v2654_v63, %v2053_v25 }
 0x6a6   : > { %v2086_v27 = vpack.c.bf16 %v2062_v24, %v2059_v23 }
 0x6a7   : > { %v2085_v28 = vpack.c.bf16 %v2054_v26, %v2051_v39 }
 0x6a9   : > { %3292 = vtanh.bf16 %v2085_v28 }
 0x6aa   : > { %3294 = vtanh.bf16 %v2086_v27 }
 0x6b4   : > { %v3293_v30 = vpop.eup %3292 }
 0x6b5   : > { %v3295_v32 = vpop.eup %3294  ;;  %3027 = vmatprep.mubr.bf16.mxu0 %v3293_v30 }
 0x6b6   : > { %3028 = vmatmul.mubr.bf16.gmra.mrb[56].mxu0 %v3295_v32 }
 0x6c2   : > { %v3001_v34 = vpop.f32.mrb[44].mxu1 }
 0x6c3   : > { %v2066_v7 = vpop.f32.mrb[45].mxu1  ;;  %v2075_v36 = vadd.f32 %v3001_v34, %v2654_v63 }
 0x6c4   : > { %v3002_v35 = vpop.f32.mrb[46].mxu1  ;;  %v2067_v41 = vadd.f32 %v2654_v63, %v2066_v7 }
 0x6c5   : > { %v2078_v37 = vadd.f32 %v3002_v35, %v2654_v63  ;;  %v2069_v38 = vpop.f32.mrb[47].mxu1 }
 0x6c6   : > { %v2070_v44 = vadd.f32 %v2654_v63, %v2069_v38 }
 0x6c7   : > { %v2088_v45 = vpack.c.bf16 %v2078_v37, %v2075_v36  ;;  %v3943_v36 = vld [vmem:[%s4080_s29] ss:$0 sm:$0xff] }
 0x6c8   : > { %v2087_v31 = vpack.c.bf16 %v2070_v44, %v2067_v41 }
 0x6ca   : > { %3296 = vtanh.bf16 %v2087_v31 }
 0x6cb   : > { %3298 = vtanh.bf16 %v2088_v45 }
 0x6d5   : > { %v3297_v46 = vpop.eup %3296 }
 0x6d6   : > { %v3299_v47 = vpop.eup %3298  ;;  %3031 = vmatprep.mubr.bf16.mxu0 %v3297_v46 }
 0x6d7   : > { %3032 = vmatmul.mubr.bf16.gmra.mrb[60].mxu0 %v3299_v47 }
 0x758   : > { %v3021_v53 = vpop.f32.mrb[48].mxu0 }
 0x759   : > { %v2219_v55 = vpop.f32.mrb[49].mxu0  ;;  %v2228_v33 = vadd.f32 %v3021_v53, %v2663_v54 }
 0x75a   : > { %v3022_v56 = vpop.f32.mrb[50].mxu0  ;;  %v2220_v60 = vadd.f32 %v2663_v54, %v2219_v55 }
 0x75b   : > { %v2231_v57 = vadd.f32 %v3022_v56, %v2663_v54  ;;  %v2222_v58 = vpop.f32.mrb[51].mxu0 }
 0x75c   : > { %v2223_v61 = vadd.f32 %v2663_v54, %v2222_v58 }
 0x75d   : > { %v2283_v62 = vpack.c.bf16 %v2231_v57, %v2228_v33 }
 0x75e   : > { %v2282_v63 = vpack.c.bf16 %v2223_v61, %v2220_v60 }
 0x760   : > { %3300 = vtanh.bf16 %v2282_v63 }
 0x761   : > { %3302 = vtanh.bf16 %v2283_v62 }
 0x764   : > { %v3025_v0 = vpop.f32.mrb[52].mxu0 }
 0x765   : > { %v2235_v1 = vpop.f32.mrb[53].mxu0  ;;  %v2244_v2 = vadd.f32 %v3025_v0, %v2663_v54 }
 0x766   : > { %v3026_v8 = vpop.f32.mrb[54].mxu0  ;;  %v2236_v6 = vadd.f32 %v2663_v54, %v2235_v1 }
 0x767   : > { %v2247_v3 = vadd.f32 %v3026_v8, %v2663_v54  ;;  %v2238_v4 = vpop.f32.mrb[55].mxu0 }
 0x768   : > { %v2239_v9 = vadd.f32 %v2663_v54, %v2238_v4 }
 0x769   : > { %v2285_v10 = vpack.c.bf16 %v2247_v3, %v2244_v2 }
 0x76a   : > { %v2284_v11 = vpack.c.bf16 %v2239_v9, %v2236_v6 }
 0x76b   : > { %v3301_v12 = vpop.eup %3300 }
 0x76c   : > { %v3303_v13 = vpop.eup %3302  ;;  %3304 = vtanh.bf16 %v2284_v11  ;;  %3051 = vmatprep.mubr.bf16.mxu1 %v3301_v12 }
 0x76d   : > { %3306 = vtanh.bf16 %v2285_v10  ;;  %3052 = vmatmul.mubr.bf16.vlgmr.msra.gmra.mrb[48].mxu1 %v3303_v13 }
 0x777   : > { %v3305_v14 = vpop.eup %3304 }
 0x778   : > { %v3307_v15 = vpop.eup %3306  ;;  %3055 = vmatprep.mubr.bf16.mxu1 %v3305_v14 }
 0x779   : > { %3056 = vmatmul.mubr.bf16.gmra.mrb[52].mxu1 %v3307_v15 }
 0x789   : > { %v3029_v16 = vpop.f32.mrb[56].mxu0 }
 0x78a   : > { %v2251_v17 = vpop.f32.mrb[57].mxu0  ;;  %v2260_v18 = vadd.f32 %v3029_v16, %v2663_v54 }
 0x78b   : > { %v3030_v43 = vpop.f32.mrb[58].mxu0  ;;  %v2252_v20 = vadd.f32 %v2663_v54, %v2251_v17 }
 0x78c   : > { %v2263_v40 = vadd.f32 %v3030_v43, %v2663_v54  ;;  %v2254_v19 = vpop.f32.mrb[59].mxu0 }
 0x78d   : > { %v2255_v42 = vadd.f32 %v2663_v54, %v2254_v19 }
 0x78e   : > { %v2287_v59 = vpack.c.bf16 %v2263_v40, %v2260_v18 }
 0x78f   : > { %v2286_v21 = vpack.c.bf16 %v2255_v42, %v2252_v20 }
 0x791   : > { %3308 = vtanh.bf16 %v2286_v21 }
 0x792   : > { %3310 = vtanh.bf16 %v2287_v59 }
 0x79c   : > { %v3309_v5 = vpop.eup %3308 }
 0x79d   : > { %v3311_v22 = vpop.eup %3310  ;;  %3059 = vmatprep.mubr.bf16.mxu1 %v3309_v5 }
 0x79e   : > { %3060 = vmatmul.mubr.bf16.gmra.mrb[56].mxu1 %v3311_v22 }
 0x7aa   : > { %v3033_v23 = vpop.f32.mrb[60].mxu0 }
 0x7ab   : > { %v2267_v24 = vpop.f32.mrb[61].mxu0  ;;  %v2276_v39 = vadd.f32 %v3033_v23, %v2663_v54 }
 0x7ac   : > { %v3034_v25 = vpop.f32.mrb[62].mxu0  ;;  %v2268_v28 = vadd.f32 %v2663_v54, %v2267_v24 }
 0x7ad   : > { %v2279_v26 = vadd.f32 %v3034_v25, %v2663_v54  ;;  %v2270_v27 = vpop.f32.mrb[63].mxu0 }
 0x7ae   : > { %v2271_v30 = vadd.f32 %v2663_v54, %v2270_v27 }
 0x7af   : > { %v2289_v32 = vpack.c.bf16 %v2279_v26, %v2276_v39 }
 0x7b0   : > { %v2288_v34 = vpack.c.bf16 %v2271_v30, %v2268_v28 }
 0x7b2   : > { %3312 = vtanh.bf16 %v2288_v34 }
 0x7b3   : > { %3314 = vtanh.bf16 %v2289_v32 }
 0x7bd   : > { %v3313_v7 = vpop.eup %3312 }
 0x7be   : > { %v3315_v35 = vpop.eup %3314  ;;  %3063 = vmatprep.mubr.bf16.mxu1 %v3313_v7 }
 0x7bf   : > { %3064 = vmatmul.mubr.bf16.gmra.mrb[60].mxu1 %v3315_v35 }
 0x840   : > { %v3053_v37 = vpop.f32.mrb[48].mxu1 }
 0x841   : > { %v2395_v38 = vadd.f32 %v3053_v37, %v3943_v36  ;;  %v2386_v41 = vpop.f32.mrb[49].mxu1 }
 0x842   : > { %v2387_v44 = vadd.f32 %v3943_v36, %v2386_v41  ;;  %v3054_v45 = vpop.f32.mrb[50].mxu1 }
 0x843   : > { %v2456_v31 = vmul.f32 1.442695, %v2395_v38  ;;  %v2398_v46 = vadd.f32 %v3054_v45, %v3943_v36  ;;  %v2389_v47 = vpop.f32.mrb[51].mxu1 }
 0x844   : > { %v2452_v48 = vmul.f32 1.442695, %v2387_v44  ;;  %v2390_v49 = vadd.f32 %v3943_v36, %v2389_v47 }
 0x845   : > { %3316 = vpow2.f32 %v2456_v31  ;;  %v2458_v50 = vmul.f32 1.442695, %v2398_v46 }
 0x846   : > { %3318 = vpow2.f32 %v2452_v48  ;;  %v2454_v51 = vmul.f32 1.442695, %v2390_v49 }
 0x847   : > { %3320 = vpow2.f32 %v2458_v50 }
 0x848   : > { %3322 = vpow2.f32 %v2454_v51 }
 0x84c   : > { %v3057_v53 = vpop.f32.mrb[52].mxu1 }
 0x84d   : > { %v2411_v54 = vadd.f32 %v3057_v53, %v3943_v36  ;;  %v2402_v55 = vpop.f32.mrb[53].mxu1 }
 0x84e   : > { %v2403_v56 = vadd.f32 %v3943_v36, %v2402_v55  ;;  %v3058_v33 = vpop.f32.mrb[54].mxu1 }
 0x84f   : > { %v3317_v29 = vpop.eup %3316  ;;  %v2464_v57 = vmul.f32 1.442695, %v2411_v54  ;;  %v2414_v58 = vadd.f32 %v3058_v33, %v3943_v36  ;;  %v2405_v60 = vpop.f32.mrb[55].mxu1 }
 0x850   : > { %v3319_v61 = vpop.eup %3318  ;;  %v2486_v62 = vsel %vm2451_vm0, %v3317_v29, %v2395_v38  ;;  %v2460_v63 = vmul.f32 1.442695, %v2403_v56  ;;  %v2406_v0 = vadd.f32 %v3943_v36, %v2405_v60 }
 0x851   : > { %v3321_v1 = vpop.eup %3320  ;;  %2503 = vst.msk [vmem:[%s3959_s21 + $0x10] sm:$0xff] %vm2500_vm1, %v2486_v62  ;;  %v2484_v8 = vsel %vm2451_vm0, %v3319_v61, %v2387_v44  ;;  %3324 = vpow2.f32 %v2464_v57  ;;  %v2466_v2 = vmul.f32 1.442695, %v2414_v58 }
 0x852   : > { %v3323_v3 = vpop.eup %3322  ;;  %2501 = vst.msk [vmem:[%s3959_s21] sm:$0xff] %vm2500_vm1, %v2484_v8  ;;  %v2487_v4 = vsel %vm2451_vm0, %v3321_v1, %v2398_v46  ;;  %3326 = vpow2.f32 %v2460_v63  ;;  %v2462_v6 = vmul.f32 1.442695, %v2406_v0 }
 0x853   : > { %2504 = vst.msk [vmem:[%s3959_s21 + $0x18] sm:$0xff] %vm2500_vm1, %v2487_v4  ;;  %v2485_v9 = vsel %vm2451_vm0, %v3323_v3, %v2390_v49  ;;  %3328 = vpow2.f32 %v2466_v2 }
 0x854   : > { %2502 = vst.msk [vmem:[%s3959_s21 + $0x8] sm:$0xff] %vm2500_vm1, %v2485_v9  ;;  %3330 = vpow2.f32 %v2462_v6 }
 0x85b   : > { %v3325_v10 = vpop.eup %3324 }
 0x85c   : > { %v3327_v11 = vpop.eup %3326  ;;  %v2490_v12 = vsel %vm2451_vm0, %v3325_v10, %v2411_v54 }
 0x85d   : > { %v3329_v13 = vpop.eup %3328  ;;  %2507 = vst.msk [vmem:[%s3959_s21 + $0x30] sm:$0xff] %vm2500_vm1, %v2490_v12  ;;  %v2488_v14 = vsel %vm2451_vm0, %v3327_v11, %v2403_v56 }
 0x85e   : > { %v3331_v15 = vpop.eup %3330  ;;  %2505 = vst.msk [vmem:[%s3959_s21 + $0x20] sm:$0xff] %vm2500_vm1, %v2488_v14  ;;  %v2491_v16 = vsel %vm2451_vm0, %v3329_v13, %v2414_v58 }
 0x85f   : > { %2508 = vst.msk [vmem:[%s3959_s21 + $0x38] sm:$0xff] %vm2500_vm1, %v2491_v16  ;;  %v2489_v17 = vsel %vm2451_vm0, %v3331_v15, %v2406_v0 }
 0x860   : > { %2506 = vst.msk [vmem:[%s3959_s21 + $0x28] sm:$0xff] %vm2500_vm1, %v2489_v17 }
 0x871   : > { %v3061_v43 = vpop.f32.mrb[56].mxu1 }
 0x872   : > { %v2427_v18 = vadd.f32 %v3061_v43, %v3943_v36  ;;  %v2418_v40 = vpop.f32.mrb[57].mxu1 }
 0x873   : > { %v2419_v19 = vadd.f32 %v3943_v36, %v2418_v40  ;;  %v3062_v20 = vpop.f32.mrb[58].mxu1 }
 0x874   : > { %v2472_v42 = vmul.f32 1.442695, %v2427_v18  ;;  %v2430_v59 = vadd.f32 %v3062_v20, %v3943_v36  ;;  %v2421_v21 = vpop.f32.mrb[59].mxu1 }
 0x875   : > { %v2468_v5 = vmul.f32 1.442695, %v2419_v19  ;;  %v2422_v22 = vadd.f32 %v3943_v36, %v2421_v21 }
 0x876   : > { %3332 = vpow2.f32 %v2472_v42  ;;  %v2474_v23 = vmul.f32 1.442695, %v2430_v59 }
 0x877   : > { %3334 = vpow2.f32 %v2468_v5  ;;  %v2470_v24 = vmul.f32 1.442695, %v2422_v22 }
 0x878   : > { %3336 = vpow2.f32 %v2474_v23 }
 0x879   : > { %3338 = vpow2.f32 %v2470_v24 }
 0x880   : > { %v3333_v25 = vpop.eup %3332 }
 0x881   : > { %v3335_v39 = vpop.eup %3334  ;;  %v2494_v26 = vsel %vm2451_vm0, %v3333_v25, %v2427_v18 }
 0x882   : > { %v3337_v27 = vpop.eup %3336  ;;  %2511 = vst.msk [vmem:[%s3959_s21 + $0x50] sm:$0xff] %vm2500_vm1, %v2494_v26  ;;  %v2492_v28 = vsel %vm2451_vm0, %v3335_v39, %v2419_v19 }
 0x883   : > { %v3339_v30 = vpop.eup %3338  ;;  %2509 = vst.msk [vmem:[%s3959_s21 + $0x40] sm:$0xff] %vm2500_vm1, %v2492_v28  ;;  %v2495_v32 = vsel %vm2451_vm0, %v3337_v27, %v2430_v59 }
 0x884   : > { %2512 = vst.msk [vmem:[%s3959_s21 + $0x58] sm:$0xff] %vm2500_vm1, %v2495_v32  ;;  %v2493_v34 = vsel %vm2451_vm0, %v3339_v30, %v2422_v22 }
 0x885   : > { %2510 = vst.msk [vmem:[%s3959_s21 + $0x48] sm:$0xff] %vm2500_vm1, %v2493_v34 }
 0x892   : > { %v3065_v7 = vpop.f32.mrb[60].mxu1 }
 0x893   : > { %v2443_v35 = vadd.f32 %v3065_v7, %v3943_v36  ;;  %v2434_v37 = vpop.f32.mrb[61].mxu1 }
 0x894   : > { %v2435_v38 = vadd.f32 %v3943_v36, %v2434_v37  ;;  %v3066_v41 = vpop.f32.mrb[62].mxu1 }
 0x895   : > { %v2480_v44 = vmul.f32 1.442695, %v2443_v35  ;;  %v2446_v45 = vadd.f32 %v3066_v41, %v3943_v36  ;;  %v2437_v31 = vpop.f32.mrb[63].mxu1 }
 0x896   : > { %v2476_v46 = vmul.f32 1.442695, %v2435_v38  ;;  %v2438_v47 = vadd.f32 %v3943_v36, %v2437_v31 }
 0x897   : > { %3340 = vpow2.f32 %v2480_v44  ;;  %v2482_v48 = vmul.f32 1.442695, %v2446_v45 }
 0x898   : > { %3342 = vpow2.f32 %v2476_v46  ;;  %v2478_v49 = vmul.f32 1.442695, %v2438_v47 }
 0x899   : > { %3344 = vpow2.f32 %v2482_v48 }
 0x89a   : > { %3346 = vpow2.f32 %v2478_v49 }
 0x8a1   : > { %v3341_v50 = vpop.eup %3340 }
 0x8a2   : > { %v3343_v51 = vpop.eup %3342  ;;  %v2498_v53 = vsel %vm2451_vm0, %v3341_v50, %v2443_v35 }
 0x8a3   : > { %v3345_v54 = vpop.eup %3344  ;;  %2515 = vst.msk [vmem:[%s3959_s21 + $0x70] sm:$0xff] %vm2500_vm1, %v2498_v53  ;;  %v2496_v55 = vsel %vm2451_vm0, %v3343_v51, %v2435_v38 }
 0x8a4   : > { %v3347_v36 = vpop.eup %3346  ;;  %2513 = vst.msk [vmem:[%s3959_s21 + $0x60] sm:$0xff] %vm2500_vm1, %v2496_v55  ;;  %v2499_v56 = vsel %vm2451_vm0, %v3345_v54, %v2446_v45 }
 0x8a5   : > { %2516 = vst.msk [vmem:[%s3959_s21 + $0x78] sm:$0xff] %vm2500_vm1, %v2499_v56  ;;  %v2497_v33 = vsel %vm2451_vm0, %v3347_v36, %v2438_v47 }
 0x8a6   : > { %2514 = vst.msk [vmem:[%s3959_s21 + $0x68] sm:$0xff] %vm2500_vm1, %v2497_v33 }
 0x8a7 PF: > { %s31_s0 = sadd.s32 1, %s3418_s0  }
 0x8a8   : > { %p28_p7 = scmp.ge.s32.totalorder %s31_s0, 4  }
 0x8aa   :  { %30 = sbr.rel (!%p28_p7) target bundleno = 9 (0x9), region = 135 }
 0x8b1   :  { %2539 = vsyncpa [#allocation3], 1 }
 0x8b2   :  { %2541 = vsyncpa [#allocation3 + $0x1], 1 }
 0x8b3   :  { %2542 = vsyncpa [#allocation5], 1 }

</bundles_post_ra>
